<compile_context>
chip_gen: v5e
topology: v5e:2x2
jax: 0.10.0
libtpu: 0.0.40
codegen_flags: <defaults>
</compile_context>

<pallas_src>
import functools
import math

import jax
import jax.numpy as jnp
from jax.experimental import pallas as pl
from jax.experimental.pallas import tpu as pltpu

_LANE = 128  # TPU lane width
_SUBLANE = 8


def _sylvester_kernel(params_ref, z_ref, fz_ref, ld_ref, *, hidden):
    """One (tile_rows, 128) batch tile of the Sylvester flow.

    params_ref : SMEM (4*H,) f32 packed as [w_hat | v_hat | w_hat*v_hat | b]
    z_ref      : VMEM (TR, 128) batch tile (128 batch elements per lane row)
    fz_ref     : VMEM (TR, 128) transformed batch
    ld_ref     : VMEM (TR, 128) log|det Jacobian|
    """
    z = z_ref[...]                                   # (TR, 128)
    fz_acc = jnp.zeros_like(z)
    det_acc = jnp.ones_like(z)                       # det = 1 + sum_h(...)

    # Accumulate over the hidden dimension with scalar parameters from SMEM.
    # Live set stays at a handful of vregs regardless of tile size.
    for h in range(hidden):
        w_h = params_ref[h]                          # w_hat[h]
        v_h = params_ref[hidden + h]                 # v_hat[h]
        wv_h = params_ref[2 * hidden + h]            # w_hat[h] * v_hat[h]
        b_h = params_ref[3 * hidden + h]             # b[h]
        t = jnp.tanh(z * w_h + b_h)                  # (TR, 128)  EUP
        fz_acc = fz_acc + v_h * t
        det_acc = det_acc + wv_h * (1.0 - t * t)

    fz_ref[...] = z + fz_acc
    ld_ref[...] = jnp.log(jnp.abs(det_acc) + 1e-6)


def _tiling(batch, max_tile_rows):
    """Choose (tile_rows, n_tiles, padded_rows) for the (rows, 128) layout."""
    rows = -(-batch // _LANE)                        # rows of 128 batch elements
    rows = -(-rows // _SUBLANE) * _SUBLANE           # sublane-align
    if rows <= _SUBLANE:
        tr = rows                                    # single 8-row slab
    else:
        # >= 2 grid steps so the "parallel" axis shards across both v7x TCs.
        tr = (-(-rows // 2) // _SUBLANE) * _SUBLANE
        tr = max(_SUBLANE, min(max_tile_rows, tr))
    n_tiles = -(-rows // tr)
    return tr, n_tiles, n_tiles * tr


def sylvester_forward(x, v, w, b, *, max_tile_rows=32):
    """Mirrors SylvesterTransform.forward.

    x : (B, 1) array, or a tuple (z, sum_log_abs_det_jacobians)
    v : (H, 1) parameter
    w : (1, H) parameter
    b : (H,)   parameter
    Returns (f_z (B,1), sum_log_abs_det_jacobians (B,)).
    """
    if isinstance(x, tuple):
        z, sum_ladj = x
    else:
        z, sum_ladj = x, jnp.float32(0.0)

    B, one = z.shape
    assert one == 1
    H = w.shape[1]
    const = math.sqrt(H) + 1e-6

    # Precompute the constrained parameters (cheap, once, outside the kernel).
    w_hat = (jnp.tanh(w.reshape(H)) / const).astype(jnp.float32)   # (H,)
    v_hat = (jnp.tanh(v.reshape(H)) / const).astype(jnp.float32)   # (H,)
    wv = w_hat * v_hat
    params = jnp.concatenate(
        [w_hat, v_hat, wv, b.reshape(H).astype(jnp.float32)])       # (4H,) SMEM

    tr, n_tiles, rows_p = _tiling(B, max_tile_rows)
    Bp = rows_p * _LANE

    z_flat = z.reshape(B).astype(jnp.float32)
    if Bp != B:
        # Zero padding yields finite values in padded lanes; sliced off below.
        z_flat = jnp.pad(z_flat, (0, Bp - B))
    z2d = z_flat.reshape(rows_p, _LANE)              # bitcast-style reshape

    kernel = functools.partial(_sylvester_kernel, hidden=H)

    fz2d, ld2d = pl.pallas_call(
        kernel,
        out_shape=(
            jax.ShapeDtypeStruct((rows_p, _LANE), jnp.float32),
            jax.ShapeDtypeStruct((rows_p, _LANE), jnp.float32),
        ),
        grid=(n_tiles,),
        in_specs=[
            pl.BlockSpec(memory_space=pltpu.MemorySpace.SMEM),      # packed params
            pl.BlockSpec((tr, _LANE), lambda i: (i, 0)),            # z tile
        ],
        out_specs=(
            pl.BlockSpec((tr, _LANE), lambda i: (i, 0)),            # f_z tile
            pl.BlockSpec((tr, _LANE), lambda i: (i, 0)),            # log|det| tile
        ),
        compiler_params=pltpu.CompilerParams(
            dimension_semantics=("parallel",)),
        cost_estimate=pl.CostEstimate(
            flops=8 * H * Bp,
            transcendentals=H * Bp,
            bytes_accessed=12 * Bp + 16 * H),
    )(params, z2d)

    fz_flat = fz2d.reshape(Bp)
    ld_flat = ld2d.reshape(Bp)
    if Bp != B:
        fz_flat = fz_flat[:B]
        ld_flat = ld_flat[:B]

    f_z = fz_flat.reshape(B, 1).astype(z.dtype)
    return f_z, sum_ladj + ld_flat


def _reference(z, v, w, b):
    """Pure-JAX reference matching the PyTorch math."""
    H = w.shape[1]
    c = math.sqrt(H) + 1e-6
    v_hat = jnp.tanh(v) / c                          # (H, 1)
    w_hat = jnp.tanh(w) / c                          # (1, H)
    pre = z @ w_hat + b                              # (B, H)
    f_z = z + jnp.tanh(pre) @ v_hat                  # (B, 1)
    sii = 1.0 - jnp.tanh(pre) ** 2
    det = 1.0 + (w_hat.squeeze() * sii * v_hat.squeeze()).sum(1)
    return f_z, jnp.log(jnp.abs(det) + 1e-6)


if __name__ == "__main__":
    hidden_size = 32
    init_sigma = 0.01

    key = jax.random.PRNGKey(0)
    kv, kw, kz, kz2 = jax.random.split(key, 4)

    # Deterministic parameter init (shapes from the module's __init__).
    v = (init_sigma * jax.random.normal(kv, (hidden_size, 1))).astype(jnp.float32)
    w = (init_sigma * jax.random.normal(kw, (1, hidden_size))).astype(jnp.float32)
    b = jnp.zeros((hidden_size,), jnp.float32)

    # Small batch (module's nominal usage).
    batch = 16
    z = jax.random.normal(kz, (batch, 1), dtype=jnp.float32)
    f_z, sum_ladj = sylvester_forward(z, v, w, b)
    f_z = jax.block_until_ready(f_z)
    sum_ladj = jax.block_until_ready(sum_ladj)
    f_ref, ladj_ref = _reference(z, v, w, b)
    assert f_z.shape == (batch, 1) and sum_ladj.shape == (batch,)
    assert jnp.allclose(f_z, f_ref, atol=1e-5, rtol=1e-5)
    assert jnp.allclose(sum_ladj, ladj_ref, atol=1e-5, rtol=1e-5)

    # Larger, non-128-aligned batch: exercises multi-tile grid + pad/slice path.
    batch2 = 2000
    z2 = jax.random.normal(kz2, (batch2, 1), dtype=jnp.float32)
    f_z2, sum_ladj2 = sylvester_forward(z2, v, w, b)
    f_z2 = jax.block_until_ready(f_z2)
    sum_ladj2 = jax.block_until_ready(sum_ladj2)
    f_ref2, ladj_ref2 = _reference(z2, v, w, b)
    assert f_z2.shape == (batch2, 1) and sum_ladj2.shape == (batch2,)
    assert jnp.allclose(f_z2, f_ref2, atol=1e-5, rtol=1e-5)
    assert jnp.allclose(sum_ladj2, ladj_ref2, atol=1e-5, rtol=1e-5)

    print("KERNEL_OK")
</pallas_src>

<mosaic_0001>
module attributes {stable_mosaic.version = 11 : i64} {
  func.func @_sylvester_kernel(%arg0: i32, %arg1: memref<128xf32, #tpu.memory_space<smem>>, %arg2: memref<8x128xf32, #tpu.memory_space<vmem>>, %arg3: memref<8x128xf32, #tpu.memory_space<vmem>>, %arg4: memref<8x128xf32, #tpu.memory_space<vmem>>) attributes {dimension_semantics = [#tpu.dimension_semantics<parallel>], iteration_bounds = array<i64: 1>, scalar_prefetch = 0 : i64, scratch_operands = 0 : i64, tpu.core_type = #tpu.core_type<tc>, window_params = [{transform_indices = @transform_0, window_bounds = array<i64: 128>}, {transform_indices = @transform_1, window_bounds = array<i64: 8, 128>}, {transform_indices = @transform_2, window_bounds = array<i64: 8, 128>}, {transform_indices = @transform_3, window_bounds = array<i64: 8, 128>}]} {
    %c0 = arith.constant 0 : index
    %c0_0 = arith.constant 0 : index
    %0 = vector.load %arg2[%c0, %c0_0] : memref<8x128xf32, #tpu.memory_space<vmem>>, vector<8x128xf32>
    %cst = arith.constant 0.000000e+00 : f32
    %1 = vector.broadcast %cst : f32 to vector<8x128xf32>
    %cst_1 = arith.constant 1.000000e+00 : f32
    %2 = vector.broadcast %cst_1 : f32 to vector<8x128xf32>
    %c0_2 = arith.constant 0 : index
    %3 = memref.load %arg1[%c0_2] : memref<128xf32, #tpu.memory_space<smem>>
    %c32 = arith.constant 32 : index
    %4 = memref.load %arg1[%c32] : memref<128xf32, #tpu.memory_space<smem>>
    %c64 = arith.constant 64 : index
    %5 = memref.load %arg1[%c64] : memref<128xf32, #tpu.memory_space<smem>>
    %c96 = arith.constant 96 : index
    %6 = memref.load %arg1[%c96] : memref<128xf32, #tpu.memory_space<smem>>
    %7 = vector.broadcast %3 : f32 to vector<8x128xf32>
    %8 = arith.mulf %0, %7 : vector<8x128xf32>
    %9 = vector.broadcast %6 : f32 to vector<8x128xf32>
    %10 = arith.addf %8, %9 : vector<8x128xf32>
    %11 = math.tanh %10 : vector<8x128xf32>
    %12 = vector.broadcast %4 : f32 to vector<8x128xf32>
    %13 = arith.mulf %12, %11 : vector<8x128xf32>
    %14 = arith.addf %1, %13 : vector<8x128xf32>
    %15 = arith.mulf %11, %11 : vector<8x128xf32>
    %cst_3 = arith.constant 1.000000e+00 : f32
    %16 = vector.broadcast %cst_3 : f32 to vector<8x128xf32>
    %17 = arith.subf %16, %15 : vector<8x128xf32>
    %18 = vector.broadcast %5 : f32 to vector<8x128xf32>
    %19 = arith.mulf %18, %17 : vector<8x128xf32>
    %20 = arith.addf %2, %19 : vector<8x128xf32>
    %c1 = arith.constant 1 : index
    %21 = memref.load %arg1[%c1] : memref<128xf32, #tpu.memory_space<smem>>
    %c33 = arith.constant 33 : index
    %22 = memref.load %arg1[%c33] : memref<128xf32, #tpu.memory_space<smem>>
    %c65 = arith.constant 65 : index
    %23 = memref.load %arg1[%c65] : memref<128xf32, #tpu.memory_space<smem>>
    %c97 = arith.constant 97 : index
    %24 = memref.load %arg1[%c97] : memref<128xf32, #tpu.memory_space<smem>>
    %25 = vector.broadcast %21 : f32 to vector<8x128xf32>
    %26 = arith.mulf %0, %25 : vector<8x128xf32>
    %27 = vector.broadcast %24 : f32 to vector<8x128xf32>
    %28 = arith.addf %26, %27 : vector<8x128xf32>
    %29 = math.tanh %28 : vector<8x128xf32>
    %30 = vector.broadcast %22 : f32 to vector<8x128xf32>
    %31 = arith.mulf %30, %29 : vector<8x128xf32>
    %32 = arith.addf %14, %31 : vector<8x128xf32>
    %33 = arith.mulf %29, %29 : vector<8x128xf32>
    %cst_4 = arith.constant 1.000000e+00 : f32
    %34 = vector.broadcast %cst_4 : f32 to vector<8x128xf32>
    %35 = arith.subf %34, %33 : vector<8x128xf32>
    %36 = vector.broadcast %23 : f32 to vector<8x128xf32>
    %37 = arith.mulf %36, %35 : vector<8x128xf32>
    %38 = arith.addf %20, %37 : vector<8x128xf32>
    %c2 = arith.constant 2 : index
    %39 = memref.load %arg1[%c2] : memref<128xf32, #tpu.memory_space<smem>>
    %c34 = arith.constant 34 : index
    %40 = memref.load %arg1[%c34] : memref<128xf32, #tpu.memory_space<smem>>
    %c66 = arith.constant 66 : index
    %41 = memref.load %arg1[%c66] : memref<128xf32, #tpu.memory_space<smem>>
    %c98 = arith.constant 98 : index
    %42 = memref.load %arg1[%c98] : memref<128xf32, #tpu.memory_space<smem>>
    %43 = vector.broadcast %39 : f32 to vector<8x128xf32>
    %44 = arith.mulf %0, %43 : vector<8x128xf32>
    %45 = vector.broadcast %42 : f32 to vector<8x128xf32>
    %46 = arith.addf %44, %45 : vector<8x128xf32>
    %47 = math.tanh %46 : vector<8x128xf32>
    %48 = vector.broadcast %40 : f32 to vector<8x128xf32>
    %49 = arith.mulf %48, %47 : vector<8x128xf32>
    %50 = arith.addf %32, %49 : vector<8x128xf32>
    %51 = arith.mulf %47, %47 : vector<8x128xf32>
    %cst_5 = arith.constant 1.000000e+00 : f32
    %52 = vector.broadcast %cst_5 : f32 to vector<8x128xf32>
    %53 = arith.subf %52, %51 : vector<8x128xf32>
    %54 = vector.broadcast %41 : f32 to vector<8x128xf32>
    %55 = arith.mulf %54, %53 : vector<8x128xf32>
    %56 = arith.addf %38, %55 : vector<8x128xf32>
    %c3 = arith.constant 3 : index
    %57 = memref.load %arg1[%c3] : memref<128xf32, #tpu.memory_space<smem>>
    %c35 = arith.constant 35 : index
    %58 = memref.load %arg1[%c35] : memref<128xf32, #tpu.memory_space<smem>>
    %c67 = arith.constant 67 : index
    %59 = memref.load %arg1[%c67] : memref<128xf32, #tpu.memory_space<smem>>
    %c99 = arith.constant 99 : index
    %60 = memref.load %arg1[%c99] : memref<128xf32, #tpu.memory_space<smem>>
    %61 = vector.broadcast %57 : f32 to vector<8x128xf32>
    %62 = arith.mulf %0, %61 : vector<8x128xf32>
    %63 = vector.broadcast %60 : f32 to vector<8x128xf32>
    %64 = arith.addf %62, %63 : vector<8x128xf32>
    %65 = math.tanh %64 : vector<8x128xf32>
    %66 = vector.broadcast %58 : f32 to vector<8x128xf32>
    %67 = arith.mulf %66, %65 : vector<8x128xf32>
    %68 = arith.addf %50, %67 : vector<8x128xf32>
    %69 = arith.mulf %65, %65 : vector<8x128xf32>
    %cst_6 = arith.constant 1.000000e+00 : f32
    %70 = vector.broadcast %cst_6 : f32 to vector<8x128xf32>
    %71 = arith.subf %70, %69 : vector<8x128xf32>
    %72 = vector.broadcast %59 : f32 to vector<8x128xf32>
    %73 = arith.mulf %72, %71 : vector<8x128xf32>
    %74 = arith.addf %56, %73 : vector<8x128xf32>
    %c4 = arith.constant 4 : index
    %75 = memref.load %arg1[%c4] : memref<128xf32, #tpu.memory_space<smem>>
    %c36 = arith.constant 36 : index
    %76 = memref.load %arg1[%c36] : memref<128xf32, #tpu.memory_space<smem>>
    %c68 = arith.constant 68 : index
    %77 = memref.load %arg1[%c68] : memref<128xf32, #tpu.memory_space<smem>>
    %c100 = arith.constant 100 : index
    %78 = memref.load %arg1[%c100] : memref<128xf32, #tpu.memory_space<smem>>
    %79 = vector.broadcast %75 : f32 to vector<8x128xf32>
    %80 = arith.mulf %0, %79 : vector<8x128xf32>
    %81 = vector.broadcast %78 : f32 to vector<8x128xf32>
    %82 = arith.addf %80, %81 : vector<8x128xf32>
    %83 = math.tanh %82 : vector<8x128xf32>
    %84 = vector.broadcast %76 : f32 to vector<8x128xf32>
    %85 = arith.mulf %84, %83 : vector<8x128xf32>
    %86 = arith.addf %68, %85 : vector<8x128xf32>
    %87 = arith.mulf %83, %83 : vector<8x128xf32>
    %cst_7 = arith.constant 1.000000e+00 : f32
    %88 = vector.broadcast %cst_7 : f32 to vector<8x128xf32>
    %89 = arith.subf %88, %87 : vector<8x128xf32>
    %90 = vector.broadcast %77 : f32 to vector<8x128xf32>
    %91 = arith.mulf %90, %89 : vector<8x128xf32>
    %92 = arith.addf %74, %91 : vector<8x128xf32>
    %c5 = arith.constant 5 : index
    %93 = memref.load %arg1[%c5] : memref<128xf32, #tpu.memory_space<smem>>
    %c37 = arith.constant 37 : index
    %94 = memref.load %arg1[%c37] : memref<128xf32, #tpu.memory_space<smem>>
    %c69 = arith.constant 69 : index
    %95 = memref.load %arg1[%c69] : memref<128xf32, #tpu.memory_space<smem>>
    %c101 = arith.constant 101 : index
    %96 = memref.load %arg1[%c101] : memref<128xf32, #tpu.memory_space<smem>>
    %97 = vector.broadcast %93 : f32 to vector<8x128xf32>
    %98 = arith.mulf %0, %97 : vector<8x128xf32>
    %99 = vector.broadcast %96 : f32 to vector<8x128xf32>
    %100 = arith.addf %98, %99 : vector<8x128xf32>
    %101 = math.tanh %100 : vector<8x128xf32>
    %102 = vector.broadcast %94 : f32 to vector<8x128xf32>
    %103 = arith.mulf %102, %101 : vector<8x128xf32>
    %104 = arith.addf %86, %103 : vector<8x128xf32>
    %105 = arith.mulf %101, %101 : vector<8x128xf32>
    %cst_8 = arith.constant 1.000000e+00 : f32
    %106 = vector.broadcast %cst_8 : f32 to vector<8x128xf32>
    %107 = arith.subf %106, %105 : vector<8x128xf32>
    %108 = vector.broadcast %95 : f32 to vector<8x128xf32>
    %109 = arith.mulf %108, %107 : vector<8x128xf32>
    %110 = arith.addf %92, %109 : vector<8x128xf32>
    %c6 = arith.constant 6 : index
    %111 = memref.load %arg1[%c6] : memref<128xf32, #tpu.memory_space<smem>>
    %c38 = arith.constant 38 : index
    %112 = memref.load %arg1[%c38] : memref<128xf32, #tpu.memory_space<smem>>
    %c70 = arith.constant 70 : index
    %113 = memref.load %arg1[%c70] : memref<128xf32, #tpu.memory_space<smem>>
    %c102 = arith.constant 102 : index
    %114 = memref.load %arg1[%c102] : memref<128xf32, #tpu.memory_space<smem>>
    %115 = vector.broadcast %111 : f32 to vector<8x128xf32>
    %116 = arith.mulf %0, %115 : vector<8x128xf32>
    %117 = vector.broadcast %114 : f32 to vector<8x128xf32>
    %118 = arith.addf %116, %117 : vector<8x128xf32>
    %119 = math.tanh %118 : vector<8x128xf32>
    %120 = vector.broadcast %112 : f32 to vector<8x128xf32>
    %121 = arith.mulf %120, %119 : vector<8x128xf32>
    %122 = arith.addf %104, %121 : vector<8x128xf32>
    %123 = arith.mulf %119, %119 : vector<8x128xf32>
    %cst_9 = arith.constant 1.000000e+00 : f32
    %124 = vector.broadcast %cst_9 : f32 to vector<8x128xf32>
    %125 = arith.subf %124, %123 : vector<8x128xf32>
    %126 = vector.broadcast %113 : f32 to vector<8x128xf32>
    %127 = arith.mulf %126, %125 : vector<8x128xf32>
    %128 = arith.addf %110, %127 : vector<8x128xf32>
    %c7 = arith.constant 7 : index
    %129 = memref.load %arg1[%c7] : memref<128xf32, #tpu.memory_space<smem>>
    %c39 = arith.constant 39 : index
    %130 = memref.load %arg1[%c39] : memref<128xf32, #tpu.memory_space<smem>>
    %c71 = arith.constant 71 : index
    %131 = memref.load %arg1[%c71] : memref<128xf32, #tpu.memory_space<smem>>
    %c103 = arith.constant 103 : index
    %132 = memref.load %arg1[%c103] : memref<128xf32, #tpu.memory_space<smem>>
    %133 = vector.broadcast %129 : f32 to vector<8x128xf32>
    %134 = arith.mulf %0, %133 : vector<8x128xf32>
    %135 = vector.broadcast %132 : f32 to vector<8x128xf32>
    %136 = arith.addf %134, %135 : vector<8x128xf32>
    %137 = math.tanh %136 : vector<8x128xf32>
    %138 = vector.broadcast %130 : f32 to vector<8x128xf32>
    %139 = arith.mulf %138, %137 : vector<8x128xf32>
    %140 = arith.addf %122, %139 : vector<8x128xf32>
    %141 = arith.mulf %137, %137 : vector<8x128xf32>
    %cst_10 = arith.constant 1.000000e+00 : f32
    %142 = vector.broadcast %cst_10 : f32 to vector<8x128xf32>
    %143 = arith.subf %142, %141 : vector<8x128xf32>
    %144 = vector.broadcast %131 : f32 to vector<8x128xf32>
    %145 = arith.mulf %144, %143 : vector<8x128xf32>
    %146 = arith.addf %128, %145 : vector<8x128xf32>
    %c8 = arith.constant 8 : index
    %147 = memref.load %arg1[%c8] : memref<128xf32, #tpu.memory_space<smem>>
    %c40 = arith.constant 40 : index
    %148 = memref.load %arg1[%c40] : memref<128xf32, #tpu.memory_space<smem>>
    %c72 = arith.constant 72 : index
    %149 = memref.load %arg1[%c72] : memref<128xf32, #tpu.memory_space<smem>>
    %c104 = arith.constant 104 : index
    %150 = memref.load %arg1[%c104] : memref<128xf32, #tpu.memory_space<smem>>
    %151 = vector.broadcast %147 : f32 to vector<8x128xf32>
    %152 = arith.mulf %0, %151 : vector<8x128xf32>
    %153 = vector.broadcast %150 : f32 to vector<8x128xf32>
    %154 = arith.addf %152, %153 : vector<8x128xf32>
    %155 = math.tanh %154 : vector<8x128xf32>
    %156 = vector.broadcast %148 : f32 to vector<8x128xf32>
    %157 = arith.mulf %156, %155 : vector<8x128xf32>
    %158 = arith.addf %140, %157 : vector<8x128xf32>
    %159 = arith.mulf %155, %155 : vector<8x128xf32>
    %cst_11 = arith.constant 1.000000e+00 : f32
    %160 = vector.broadcast %cst_11 : f32 to vector<8x128xf32>
    %161 = arith.subf %160, %159 : vector<8x128xf32>
    %162 = vector.broadcast %149 : f32 to vector<8x128xf32>
    %163 = arith.mulf %162, %161 : vector<8x128xf32>
    %164 = arith.addf %146, %163 : vector<8x128xf32>
    %c9 = arith.constant 9 : index
    %165 = memref.load %arg1[%c9] : memref<128xf32, #tpu.memory_space<smem>>
    %c41 = arith.constant 41 : index
    %166 = memref.load %arg1[%c41] : memref<128xf32, #tpu.memory_space<smem>>
    %c73 = arith.constant 73 : index
    %167 = memref.load %arg1[%c73] : memref<128xf32, #tpu.memory_space<smem>>
    %c105 = arith.constant 105 : index
    %168 = memref.load %arg1[%c105] : memref<128xf32, #tpu.memory_space<smem>>
    %169 = vector.broadcast %165 : f32 to vector<8x128xf32>
    %170 = arith.mulf %0, %169 : vector<8x128xf32>
    %171 = vector.broadcast %168 : f32 to vector<8x128xf32>
    %172 = arith.addf %170, %171 : vector<8x128xf32>
    %173 = math.tanh %172 : vector<8x128xf32>
    %174 = vector.broadcast %166 : f32 to vector<8x128xf32>
    %175 = arith.mulf %174, %173 : vector<8x128xf32>
    %176 = arith.addf %158, %175 : vector<8x128xf32>
    %177 = arith.mulf %173, %173 : vector<8x128xf32>
    %cst_12 = arith.constant 1.000000e+00 : f32
    %178 = vector.broadcast %cst_12 : f32 to vector<8x128xf32>
    %179 = arith.subf %178, %177 : vector<8x128xf32>
    %180 = vector.broadcast %167 : f32 to vector<8x128xf32>
    %181 = arith.mulf %180, %179 : vector<8x128xf32>
    %182 = arith.addf %164, %181 : vector<8x128xf32>
    %c10 = arith.constant 10 : index
    %183 = memref.load %arg1[%c10] : memref<128xf32, #tpu.memory_space<smem>>
    %c42 = arith.constant 42 : index
    %184 = memref.load %arg1[%c42] : memref<128xf32, #tpu.memory_space<smem>>
    %c74 = arith.constant 74 : index
    %185 = memref.load %arg1[%c74] : memref<128xf32, #tpu.memory_space<smem>>
    %c106 = arith.constant 106 : index
    %186 = memref.load %arg1[%c106] : memref<128xf32, #tpu.memory_space<smem>>
    %187 = vector.broadcast %183 : f32 to vector<8x128xf32>
    %188 = arith.mulf %0, %187 : vector<8x128xf32>
    %189 = vector.broadcast %186 : f32 to vector<8x128xf32>
    %190 = arith.addf %188, %189 : vector<8x128xf32>
    %191 = math.tanh %190 : vector<8x128xf32>
    %192 = vector.broadcast %184 : f32 to vector<8x128xf32>
    %193 = arith.mulf %192, %191 : vector<8x128xf32>
    %194 = arith.addf %176, %193 : vector<8x128xf32>
    %195 = arith.mulf %191, %191 : vector<8x128xf32>
    %cst_13 = arith.constant 1.000000e+00 : f32
    %196 = vector.broadcast %cst_13 : f32 to vector<8x128xf32>
    %197 = arith.subf %196, %195 : vector<8x128xf32>
    %198 = vector.broadcast %185 : f32 to vector<8x128xf32>
    %199 = arith.mulf %198, %197 : vector<8x128xf32>
    %200 = arith.addf %182, %199 : vector<8x128xf32>
    %c11 = arith.constant 11 : index
    %201 = memref.load %arg1[%c11] : memref<128xf32, #tpu.memory_space<smem>>
    %c43 = arith.constant 43 : index
    %202 = memref.load %arg1[%c43] : memref<128xf32, #tpu.memory_space<smem>>
    %c75 = arith.constant 75 : index
    %203 = memref.load %arg1[%c75] : memref<128xf32, #tpu.memory_space<smem>>
    %c107 = arith.constant 107 : index
    %204 = memref.load %arg1[%c107] : memref<128xf32, #tpu.memory_space<smem>>
    %205 = vector.broadcast %201 : f32 to vector<8x128xf32>
    %206 = arith.mulf %0, %205 : vector<8x128xf32>
    %207 = vector.broadcast %204 : f32 to vector<8x128xf32>
    %208 = arith.addf %206, %207 : vector<8x128xf32>
    %209 = math.tanh %208 : vector<8x128xf32>
    %210 = vector.broadcast %202 : f32 to vector<8x128xf32>
    %211 = arith.mulf %210, %209 : vector<8x128xf32>
    %212 = arith.addf %194, %211 : vector<8x128xf32>
    %213 = arith.mulf %209, %209 : vector<8x128xf32>
    %cst_14 = arith.constant 1.000000e+00 : f32
    %214 = vector.broadcast %cst_14 : f32 to vector<8x128xf32>
    %215 = arith.subf %214, %213 : vector<8x128xf32>
    %216 = vector.broadcast %203 : f32 to vector<8x128xf32>
    %217 = arith.mulf %216, %215 : vector<8x128xf32>
    %218 = arith.addf %200, %217 : vector<8x128xf32>
    %c12 = arith.constant 12 : index
    %219 = memref.load %arg1[%c12] : memref<128xf32, #tpu.memory_space<smem>>
    %c44 = arith.constant 44 : index
    %220 = memref.load %arg1[%c44] : memref<128xf32, #tpu.memory_space<smem>>
    %c76 = arith.constant 76 : index
    %221 = memref.load %arg1[%c76] : memref<128xf32, #tpu.memory_space<smem>>
    %c108 = arith.constant 108 : index
    %222 = memref.load %arg1[%c108] : memref<128xf32, #tpu.memory_space<smem>>
    %223 = vector.broadcast %219 : f32 to vector<8x128xf32>
    %224 = arith.mulf %0, %223 : vector<8x128xf32>
    %225 = vector.broadcast %222 : f32 to vector<8x128xf32>
    %226 = arith.addf %224, %225 : vector<8x128xf32>
    %227 = math.tanh %226 : vector<8x128xf32>
    %228 = vector.broadcast %220 : f32 to vector<8x128xf32>
    %229 = arith.mulf %228, %227 : vector<8x128xf32>
    %230 = arith.addf %212, %229 : vector<8x128xf32>
    %231 = arith.mulf %227, %227 : vector<8x128xf32>
    %cst_15 = arith.constant 1.000000e+00 : f32
    %232 = vector.broadcast %cst_15 : f32 to vector<8x128xf32>
    %233 = arith.subf %232, %231 : vector<8x128xf32>
    %234 = vector.broadcast %221 : f32 to vector<8x128xf32>
    %235 = arith.mulf %234, %233 : vector<8x128xf32>
    %236 = arith.addf %218, %235 : vector<8x128xf32>
    %c13 = arith.constant 13 : index
    %237 = memref.load %arg1[%c13] : memref<128xf32, #tpu.memory_space<smem>>
    %c45 = arith.constant 45 : index
    %238 = memref.load %arg1[%c45] : memref<128xf32, #tpu.memory_space<smem>>
    %c77 = arith.constant 77 : index
    %239 = memref.load %arg1[%c77] : memref<128xf32, #tpu.memory_space<smem>>
    %c109 = arith.constant 109 : index
    %240 = memref.load %arg1[%c109] : memref<128xf32, #tpu.memory_space<smem>>
    %241 = vector.broadcast %237 : f32 to vector<8x128xf32>
    %242 = arith.mulf %0, %241 : vector<8x128xf32>
    %243 = vector.broadcast %240 : f32 to vector<8x128xf32>
    %244 = arith.addf %242, %243 : vector<8x128xf32>
    %245 = math.tanh %244 : vector<8x128xf32>
    %246 = vector.broadcast %238 : f32 to vector<8x128xf32>
    %247 = arith.mulf %246, %245 : vector<8x128xf32>
    %248 = arith.addf %230, %247 : vector<8x128xf32>
    %249 = arith.mulf %245, %245 : vector<8x128xf32>
    %cst_16 = arith.constant 1.000000e+00 : f32
    %250 = vector.broadcast %cst_16 : f32 to vector<8x128xf32>
    %251 = arith.subf %250, %249 : vector<8x128xf32>
    %252 = vector.broadcast %239 : f32 to vector<8x128xf32>
    %253 = arith.mulf %252, %251 : vector<8x128xf32>
    %254 = arith.addf %236, %253 : vector<8x128xf32>
    %c14 = arith.constant 14 : index
    %255 = memref.load %arg1[%c14] : memref<128xf32, #tpu.memory_space<smem>>
    %c46 = arith.constant 46 : index
    %256 = memref.load %arg1[%c46] : memref<128xf32, #tpu.memory_space<smem>>
    %c78 = arith.constant 78 : index
    %257 = memref.load %arg1[%c78] : memref<128xf32, #tpu.memory_space<smem>>
    %c110 = arith.constant 110 : index
    %258 = memref.load %arg1[%c110] : memref<128xf32, #tpu.memory_space<smem>>
    %259 = vector.broadcast %255 : f32 to vector<8x128xf32>
    %260 = arith.mulf %0, %259 : vector<8x128xf32>
    %261 = vector.broadcast %258 : f32 to vector<8x128xf32>
    %262 = arith.addf %260, %261 : vector<8x128xf32>
    %263 = math.tanh %262 : vector<8x128xf32>
    %264 = vector.broadcast %256 : f32 to vector<8x128xf32>
    %265 = arith.mulf %264, %263 : vector<8x128xf32>
    %266 = arith.addf %248, %265 : vector<8x128xf32>
    %267 = arith.mulf %263, %263 : vector<8x128xf32>
    %cst_17 = arith.constant 1.000000e+00 : f32
    %268 = vector.broadcast %cst_17 : f32 to vector<8x128xf32>
    %269 = arith.subf %268, %267 : vector<8x128xf32>
    %270 = vector.broadcast %257 : f32 to vector<8x128xf32>
    %271 = arith.mulf %270, %269 : vector<8x128xf32>
    %272 = arith.addf %254, %271 : vector<8x128xf32>
    %c15 = arith.constant 15 : index
    %273 = memref.load %arg1[%c15] : memref<128xf32, #tpu.memory_space<smem>>
    %c47 = arith.constant 47 : index
    %274 = memref.load %arg1[%c47] : memref<128xf32, #tpu.memory_space<smem>>
    %c79 = arith.constant 79 : index
    %275 = memref.load %arg1[%c79] : memref<128xf32, #tpu.memory_space<smem>>
    %c111 = arith.constant 111 : index
    %276 = memref.load %arg1[%c111] : memref<128xf32, #tpu.memory_space<smem>>
    %277 = vector.broadcast %273 : f32 to vector<8x128xf32>
    %278 = arith.mulf %0, %277 : vector<8x128xf32>
    %279 = vector.broadcast %276 : f32 to vector<8x128xf32>
    %280 = arith.addf %278, %279 : vector<8x128xf32>
    %281 = math.tanh %280 : vector<8x128xf32>
    %282 = vector.broadcast %274 : f32 to vector<8x128xf32>
    %283 = arith.mulf %282, %281 : vector<8x128xf32>
    %284 = arith.addf %266, %283 : vector<8x128xf32>
    %285 = arith.mulf %281, %281 : vector<8x128xf32>
    %cst_18 = arith.constant 1.000000e+00 : f32
    %286 = vector.broadcast %cst_18 : f32 to vector<8x128xf32>
    %287 = arith.subf %286, %285 : vector<8x128xf32>
    %288 = vector.broadcast %275 : f32 to vector<8x128xf32>
    %289 = arith.mulf %288, %287 : vector<8x128xf32>
    %290 = arith.addf %272, %289 : vector<8x128xf32>
    %c16 = arith.constant 16 : index
    %291 = memref.load %arg1[%c16] : memref<128xf32, #tpu.memory_space<smem>>
    %c48 = arith.constant 48 : index
    %292 = memref.load %arg1[%c48] : memref<128xf32, #tpu.memory_space<smem>>
    %c80 = arith.constant 80 : index
    %293 = memref.load %arg1[%c80] : memref<128xf32, #tpu.memory_space<smem>>
    %c112 = arith.constant 112 : index
    %294 = memref.load %arg1[%c112] : memref<128xf32, #tpu.memory_space<smem>>
    %295 = vector.broadcast %291 : f32 to vector<8x128xf32>
    %296 = arith.mulf %0, %295 : vector<8x128xf32>
    %297 = vector.broadcast %294 : f32 to vector<8x128xf32>
    %298 = arith.addf %296, %297 : vector<8x128xf32>
    %299 = math.tanh %298 : vector<8x128xf32>
    %300 = vector.broadcast %292 : f32 to vector<8x128xf32>
    %301 = arith.mulf %300, %299 : vector<8x128xf32>
    %302 = arith.addf %284, %301 : vector<8x128xf32>
    %303 = arith.mulf %299, %299 : vector<8x128xf32>
    %cst_19 = arith.constant 1.000000e+00 : f32
    %304 = vector.broadcast %cst_19 : f32 to vector<8x128xf32>
    %305 = arith.subf %304, %303 : vector<8x128xf32>
    %306 = vector.broadcast %293 : f32 to vector<8x128xf32>
    %307 = arith.mulf %306, %305 : vector<8x128xf32>
    %308 = arith.addf %290, %307 : vector<8x128xf32>
    %c17 = arith.constant 17 : index
    %309 = memref.load %arg1[%c17] : memref<128xf32, #tpu.memory_space<smem>>
    %c49 = arith.constant 49 : index
    %310 = memref.load %arg1[%c49] : memref<128xf32, #tpu.memory_space<smem>>
    %c81 = arith.constant 81 : index
    %311 = memref.load %arg1[%c81] : memref<128xf32, #tpu.memory_space<smem>>
    %c113 = arith.constant 113 : index
    %312 = memref.load %arg1[%c113] : memref<128xf32, #tpu.memory_space<smem>>
    %313 = vector.broadcast %309 : f32 to vector<8x128xf32>
    %314 = arith.mulf %0, %313 : vector<8x128xf32>
    %315 = vector.broadcast %312 : f32 to vector<8x128xf32>
    %316 = arith.addf %314, %315 : vector<8x128xf32>
    %317 = math.tanh %316 : vector<8x128xf32>
    %318 = vector.broadcast %310 : f32 to vector<8x128xf32>
    %319 = arith.mulf %318, %317 : vector<8x128xf32>
    %320 = arith.addf %302, %319 : vector<8x128xf32>
    %321 = arith.mulf %317, %317 : vector<8x128xf32>
    %cst_20 = arith.constant 1.000000e+00 : f32
    %322 = vector.broadcast %cst_20 : f32 to vector<8x128xf32>
    %323 = arith.subf %322, %321 : vector<8x128xf32>
    %324 = vector.broadcast %311 : f32 to vector<8x128xf32>
    %325 = arith.mulf %324, %323 : vector<8x128xf32>
    %326 = arith.addf %308, %325 : vector<8x128xf32>
    %c18 = arith.constant 18 : index
    %327 = memref.load %arg1[%c18] : memref<128xf32, #tpu.memory_space<smem>>
    %c50 = arith.constant 50 : index
    %328 = memref.load %arg1[%c50] : memref<128xf32, #tpu.memory_space<smem>>
    %c82 = arith.constant 82 : index
    %329 = memref.load %arg1[%c82] : memref<128xf32, #tpu.memory_space<smem>>
    %c114 = arith.constant 114 : index
    %330 = memref.load %arg1[%c114] : memref<128xf32, #tpu.memory_space<smem>>
    %331 = vector.broadcast %327 : f32 to vector<8x128xf32>
    %332 = arith.mulf %0, %331 : vector<8x128xf32>
    %333 = vector.broadcast %330 : f32 to vector<8x128xf32>
    %334 = arith.addf %332, %333 : vector<8x128xf32>
    %335 = math.tanh %334 : vector<8x128xf32>
    %336 = vector.broadcast %328 : f32 to vector<8x128xf32>
    %337 = arith.mulf %336, %335 : vector<8x128xf32>
    %338 = arith.addf %320, %337 : vector<8x128xf32>
    %339 = arith.mulf %335, %335 : vector<8x128xf32>
    %cst_21 = arith.constant 1.000000e+00 : f32
    %340 = vector.broadcast %cst_21 : f32 to vector<8x128xf32>
    %341 = arith.subf %340, %339 : vector<8x128xf32>
    %342 = vector.broadcast %329 : f32 to vector<8x128xf32>
    %343 = arith.mulf %342, %341 : vector<8x128xf32>
    %344 = arith.addf %326, %343 : vector<8x128xf32>
    %c19 = arith.constant 19 : index
    %345 = memref.load %arg1[%c19] : memref<128xf32, #tpu.memory_space<smem>>
    %c51 = arith.constant 51 : index
    %346 = memref.load %arg1[%c51] : memref<128xf32, #tpu.memory_space<smem>>
    %c83 = arith.constant 83 : index
    %347 = memref.load %arg1[%c83] : memref<128xf32, #tpu.memory_space<smem>>
    %c115 = arith.constant 115 : index
    %348 = memref.load %arg1[%c115] : memref<128xf32, #tpu.memory_space<smem>>
    %349 = vector.broadcast %345 : f32 to vector<8x128xf32>
    %350 = arith.mulf %0, %349 : vector<8x128xf32>
    %351 = vector.broadcast %348 : f32 to vector<8x128xf32>
    %352 = arith.addf %350, %351 : vector<8x128xf32>
    %353 = math.tanh %352 : vector<8x128xf32>
    %354 = vector.broadcast %346 : f32 to vector<8x128xf32>
    %355 = arith.mulf %354, %353 : vector<8x128xf32>
    %356 = arith.addf %338, %355 : vector<8x128xf32>
    %357 = arith.mulf %353, %353 : vector<8x128xf32>
    %cst_22 = arith.constant 1.000000e+00 : f32
    %358 = vector.broadcast %cst_22 : f32 to vector<8x128xf32>
    %359 = arith.subf %358, %357 : vector<8x128xf32>
    %360 = vector.broadcast %347 : f32 to vector<8x128xf32>
    %361 = arith.mulf %360, %359 : vector<8x128xf32>
    %362 = arith.addf %344, %361 : vector<8x128xf32>
    %c20 = arith.constant 20 : index
    %363 = memref.load %arg1[%c20] : memref<128xf32, #tpu.memory_space<smem>>
    %c52 = arith.constant 52 : index
    %364 = memref.load %arg1[%c52] : memref<128xf32, #tpu.memory_space<smem>>
    %c84 = arith.constant 84 : index
    %365 = memref.load %arg1[%c84] : memref<128xf32, #tpu.memory_space<smem>>
    %c116 = arith.constant 116 : index
    %366 = memref.load %arg1[%c116] : memref<128xf32, #tpu.memory_space<smem>>
    %367 = vector.broadcast %363 : f32 to vector<8x128xf32>
    %368 = arith.mulf %0, %367 : vector<8x128xf32>
    %369 = vector.broadcast %366 : f32 to vector<8x128xf32>
    %370 = arith.addf %368, %369 : vector<8x128xf32>
    %371 = math.tanh %370 : vector<8x128xf32>
    %372 = vector.broadcast %364 : f32 to vector<8x128xf32>
    %373 = arith.mulf %372, %371 : vector<8x128xf32>
    %374 = arith.addf %356, %373 : vector<8x128xf32>
    %375 = arith.mulf %371, %371 : vector<8x128xf32>
    %cst_23 = arith.constant 1.000000e+00 : f32
    %376 = vector.broadcast %cst_23 : f32 to vector<8x128xf32>
    %377 = arith.subf %376, %375 : vector<8x128xf32>
    %378 = vector.broadcast %365 : f32 to vector<8x128xf32>
    %379 = arith.mulf %378, %377 : vector<8x128xf32>
    %380 = arith.addf %362, %379 : vector<8x128xf32>
    %c21 = arith.constant 21 : index
    %381 = memref.load %arg1[%c21] : memref<128xf32, #tpu.memory_space<smem>>
    %c53 = arith.constant 53 : index
    %382 = memref.load %arg1[%c53] : memref<128xf32, #tpu.memory_space<smem>>
    %c85 = arith.constant 85 : index
    %383 = memref.load %arg1[%c85] : memref<128xf32, #tpu.memory_space<smem>>
    %c117 = arith.constant 117 : index
    %384 = memref.load %arg1[%c117] : memref<128xf32, #tpu.memory_space<smem>>
    %385 = vector.broadcast %381 : f32 to vector<8x128xf32>
    %386 = arith.mulf %0, %385 : vector<8x128xf32>
    %387 = vector.broadcast %384 : f32 to vector<8x128xf32>
    %388 = arith.addf %386, %387 : vector<8x128xf32>
    %389 = math.tanh %388 : vector<8x128xf32>
    %390 = vector.broadcast %382 : f32 to vector<8x128xf32>
    %391 = arith.mulf %390, %389 : vector<8x128xf32>
    %392 = arith.addf %374, %391 : vector<8x128xf32>
    %393 = arith.mulf %389, %389 : vector<8x128xf32>
    %cst_24 = arith.constant 1.000000e+00 : f32
    %394 = vector.broadcast %cst_24 : f32 to vector<8x128xf32>
    %395 = arith.subf %394, %393 : vector<8x128xf32>
    %396 = vector.broadcast %383 : f32 to vector<8x128xf32>
    %397 = arith.mulf %396, %395 : vector<8x128xf32>
    %398 = arith.addf %380, %397 : vector<8x128xf32>
    %c22 = arith.constant 22 : index
    %399 = memref.load %arg1[%c22] : memref<128xf32, #tpu.memory_space<smem>>
    %c54 = arith.constant 54 : index
    %400 = memref.load %arg1[%c54] : memref<128xf32, #tpu.memory_space<smem>>
    %c86 = arith.constant 86 : index
    %401 = memref.load %arg1[%c86] : memref<128xf32, #tpu.memory_space<smem>>
    %c118 = arith.constant 118 : index
    %402 = memref.load %arg1[%c118] : memref<128xf32, #tpu.memory_space<smem>>
    %403 = vector.broadcast %399 : f32 to vector<8x128xf32>
    %404 = arith.mulf %0, %403 : vector<8x128xf32>
    %405 = vector.broadcast %402 : f32 to vector<8x128xf32>
    %406 = arith.addf %404, %405 : vector<8x128xf32>
    %407 = math.tanh %406 : vector<8x128xf32>
    %408 = vector.broadcast %400 : f32 to vector<8x128xf32>
    %409 = arith.mulf %408, %407 : vector<8x128xf32>
    %410 = arith.addf %392, %409 : vector<8x128xf32>
    %411 = arith.mulf %407, %407 : vector<8x128xf32>
    %cst_25 = arith.constant 1.000000e+00 : f32
    %412 = vector.broadcast %cst_25 : f32 to vector<8x128xf32>
    %413 = arith.subf %412, %411 : vector<8x128xf32>
    %414 = vector.broadcast %401 : f32 to vector<8x128xf32>
    %415 = arith.mulf %414, %413 : vector<8x128xf32>
    %416 = arith.addf %398, %415 : vector<8x128xf32>
    %c23 = arith.constant 23 : index
    %417 = memref.load %arg1[%c23] : memref<128xf32, #tpu.memory_space<smem>>
    %c55 = arith.constant 55 : index
    %418 = memref.load %arg1[%c55] : memref<128xf32, #tpu.memory_space<smem>>
    %c87 = arith.constant 87 : index
    %419 = memref.load %arg1[%c87] : memref<128xf32, #tpu.memory_space<smem>>
    %c119 = arith.constant 119 : index
    %420 = memref.load %arg1[%c119] : memref<128xf32, #tpu.memory_space<smem>>
    %421 = vector.broadcast %417 : f32 to vector<8x128xf32>
    %422 = arith.mulf %0, %421 : vector<8x128xf32>
    %423 = vector.broadcast %420 : f32 to vector<8x128xf32>
    %424 = arith.addf %422, %423 : vector<8x128xf32>
    %425 = math.tanh %424 : vector<8x128xf32>
    %426 = vector.broadcast %418 : f32 to vector<8x128xf32>
    %427 = arith.mulf %426, %425 : vector<8x128xf32>
    %428 = arith.addf %410, %427 : vector<8x128xf32>
    %429 = arith.mulf %425, %425 : vector<8x128xf32>
    %cst_26 = arith.constant 1.000000e+00 : f32
    %430 = vector.broadcast %cst_26 : f32 to vector<8x128xf32>
    %431 = arith.subf %430, %429 : vector<8x128xf32>
    %432 = vector.broadcast %419 : f32 to vector<8x128xf32>
    %433 = arith.mulf %432, %431 : vector<8x128xf32>
    %434 = arith.addf %416, %433 : vector<8x128xf32>
    %c24 = arith.constant 24 : index
    %435 = memref.load %arg1[%c24] : memref<128xf32, #tpu.memory_space<smem>>
    %c56 = arith.constant 56 : index
    %436 = memref.load %arg1[%c56] : memref<128xf32, #tpu.memory_space<smem>>
    %c88 = arith.constant 88 : index
    %437 = memref.load %arg1[%c88] : memref<128xf32, #tpu.memory_space<smem>>
    %c120 = arith.constant 120 : index
    %438 = memref.load %arg1[%c120] : memref<128xf32, #tpu.memory_space<smem>>
    %439 = vector.broadcast %435 : f32 to vector<8x128xf32>
    %440 = arith.mulf %0, %439 : vector<8x128xf32>
    %441 = vector.broadcast %438 : f32 to vector<8x128xf32>
    %442 = arith.addf %440, %441 : vector<8x128xf32>
    %443 = math.tanh %442 : vector<8x128xf32>
    %444 = vector.broadcast %436 : f32 to vector<8x128xf32>
    %445 = arith.mulf %444, %443 : vector<8x128xf32>
    %446 = arith.addf %428, %445 : vector<8x128xf32>
    %447 = arith.mulf %443, %443 : vector<8x128xf32>
    %cst_27 = arith.constant 1.000000e+00 : f32
    %448 = vector.broadcast %cst_27 : f32 to vector<8x128xf32>
    %449 = arith.subf %448, %447 : vector<8x128xf32>
    %450 = vector.broadcast %437 : f32 to vector<8x128xf32>
    %451 = arith.mulf %450, %449 : vector<8x128xf32>
    %452 = arith.addf %434, %451 : vector<8x128xf32>
    %c25 = arith.constant 25 : index
    %453 = memref.load %arg1[%c25] : memref<128xf32, #tpu.memory_space<smem>>
    %c57 = arith.constant 57 : index
    %454 = memref.load %arg1[%c57] : memref<128xf32, #tpu.memory_space<smem>>
    %c89 = arith.constant 89 : index
    %455 = memref.load %arg1[%c89] : memref<128xf32, #tpu.memory_space<smem>>
    %c121 = arith.constant 121 : index
    %456 = memref.load %arg1[%c121] : memref<128xf32, #tpu.memory_space<smem>>
    %457 = vector.broadcast %453 : f32 to vector<8x128xf32>
    %458 = arith.mulf %0, %457 : vector<8x128xf32>
    %459 = vector.broadcast %456 : f32 to vector<8x128xf32>
    %460 = arith.addf %458, %459 : vector<8x128xf32>
    %461 = math.tanh %460 : vector<8x128xf32>
    %462 = vector.broadcast %454 : f32 to vector<8x128xf32>
    %463 = arith.mulf %462, %461 : vector<8x128xf32>
    %464 = arith.addf %446, %463 : vector<8x128xf32>
    %465 = arith.mulf %461, %461 : vector<8x128xf32>
    %cst_28 = arith.constant 1.000000e+00 : f32
    %466 = vector.broadcast %cst_28 : f32 to vector<8x128xf32>
    %467 = arith.subf %466, %465 : vector<8x128xf32>
    %468 = vector.broadcast %455 : f32 to vector<8x128xf32>
    %469 = arith.mulf %468, %467 : vector<8x128xf32>
    %470 = arith.addf %452, %469 : vector<8x128xf32>
    %c26 = arith.constant 26 : index
    %471 = memref.load %arg1[%c26] : memref<128xf32, #tpu.memory_space<smem>>
    %c58 = arith.constant 58 : index
    %472 = memref.load %arg1[%c58] : memref<128xf32, #tpu.memory_space<smem>>
    %c90 = arith.constant 90 : index
    %473 = memref.load %arg1[%c90] : memref<128xf32, #tpu.memory_space<smem>>
    %c122 = arith.constant 122 : index
    %474 = memref.load %arg1[%c122] : memref<128xf32, #tpu.memory_space<smem>>
    %475 = vector.broadcast %471 : f32 to vector<8x128xf32>
    %476 = arith.mulf %0, %475 : vector<8x128xf32>
    %477 = vector.broadcast %474 : f32 to vector<8x128xf32>
    %478 = arith.addf %476, %477 : vector<8x128xf32>
    %479 = math.tanh %478 : vector<8x128xf32>
    %480 = vector.broadcast %472 : f32 to vector<8x128xf32>
    %481 = arith.mulf %480, %479 : vector<8x128xf32>
    %482 = arith.addf %464, %481 : vector<8x128xf32>
    %483 = arith.mulf %479, %479 : vector<8x128xf32>
    %cst_29 = arith.constant 1.000000e+00 : f32
    %484 = vector.broadcast %cst_29 : f32 to vector<8x128xf32>
    %485 = arith.subf %484, %483 : vector<8x128xf32>
    %486 = vector.broadcast %473 : f32 to vector<8x128xf32>
    %487 = arith.mulf %486, %485 : vector<8x128xf32>
    %488 = arith.addf %470, %487 : vector<8x128xf32>
    %c27 = arith.constant 27 : index
    %489 = memref.load %arg1[%c27] : memref<128xf32, #tpu.memory_space<smem>>
    %c59 = arith.constant 59 : index
    %490 = memref.load %arg1[%c59] : memref<128xf32, #tpu.memory_space<smem>>
    %c91 = arith.constant 91 : index
    %491 = memref.load %arg1[%c91] : memref<128xf32, #tpu.memory_space<smem>>
    %c123 = arith.constant 123 : index
    %492 = memref.load %arg1[%c123] : memref<128xf32, #tpu.memory_space<smem>>
    %493 = vector.broadcast %489 : f32 to vector<8x128xf32>
    %494 = arith.mulf %0, %493 : vector<8x128xf32>
    %495 = vector.broadcast %492 : f32 to vector<8x128xf32>
    %496 = arith.addf %494, %495 : vector<8x128xf32>
    %497 = math.tanh %496 : vector<8x128xf32>
    %498 = vector.broadcast %490 : f32 to vector<8x128xf32>
    %499 = arith.mulf %498, %497 : vector<8x128xf32>
    %500 = arith.addf %482, %499 : vector<8x128xf32>
    %501 = arith.mulf %497, %497 : vector<8x128xf32>
    %cst_30 = arith.constant 1.000000e+00 : f32
    %502 = vector.broadcast %cst_30 : f32 to vector<8x128xf32>
    %503 = arith.subf %502, %501 : vector<8x128xf32>
    %504 = vector.broadcast %491 : f32 to vector<8x128xf32>
    %505 = arith.mulf %504, %503 : vector<8x128xf32>
    %506 = arith.addf %488, %505 : vector<8x128xf32>
    %c28 = arith.constant 28 : index
    %507 = memref.load %arg1[%c28] : memref<128xf32, #tpu.memory_space<smem>>
    %c60 = arith.constant 60 : index
    %508 = memref.load %arg1[%c60] : memref<128xf32, #tpu.memory_space<smem>>
    %c92 = arith.constant 92 : index
    %509 = memref.load %arg1[%c92] : memref<128xf32, #tpu.memory_space<smem>>
    %c124 = arith.constant 124 : index
    %510 = memref.load %arg1[%c124] : memref<128xf32, #tpu.memory_space<smem>>
    %511 = vector.broadcast %507 : f32 to vector<8x128xf32>
    %512 = arith.mulf %0, %511 : vector<8x128xf32>
    %513 = vector.broadcast %510 : f32 to vector<8x128xf32>
    %514 = arith.addf %512, %513 : vector<8x128xf32>
    %515 = math.tanh %514 : vector<8x128xf32>
    %516 = vector.broadcast %508 : f32 to vector<8x128xf32>
    %517 = arith.mulf %516, %515 : vector<8x128xf32>
    %518 = arith.addf %500, %517 : vector<8x128xf32>
    %519 = arith.mulf %515, %515 : vector<8x128xf32>
    %cst_31 = arith.constant 1.000000e+00 : f32
    %520 = vector.broadcast %cst_31 : f32 to vector<8x128xf32>
    %521 = arith.subf %520, %519 : vector<8x128xf32>
    %522 = vector.broadcast %509 : f32 to vector<8x128xf32>
    %523 = arith.mulf %522, %521 : vector<8x128xf32>
    %524 = arith.addf %506, %523 : vector<8x128xf32>
    %c29 = arith.constant 29 : index
    %525 = memref.load %arg1[%c29] : memref<128xf32, #tpu.memory_space<smem>>
    %c61 = arith.constant 61 : index
    %526 = memref.load %arg1[%c61] : memref<128xf32, #tpu.memory_space<smem>>
    %c93 = arith.constant 93 : index
    %527 = memref.load %arg1[%c93] : memref<128xf32, #tpu.memory_space<smem>>
    %c125 = arith.constant 125 : index
    %528 = memref.load %arg1[%c125] : memref<128xf32, #tpu.memory_space<smem>>
    %529 = vector.broadcast %525 : f32 to vector<8x128xf32>
    %530 = arith.mulf %0, %529 : vector<8x128xf32>
    %531 = vector.broadcast %528 : f32 to vector<8x128xf32>
    %532 = arith.addf %530, %531 : vector<8x128xf32>
    %533 = math.tanh %532 : vector<8x128xf32>
    %534 = vector.broadcast %526 : f32 to vector<8x128xf32>
    %535 = arith.mulf %534, %533 : vector<8x128xf32>
    %536 = arith.addf %518, %535 : vector<8x128xf32>
    %537 = arith.mulf %533, %533 : vector<8x128xf32>
    %cst_32 = arith.constant 1.000000e+00 : f32
    %538 = vector.broadcast %cst_32 : f32 to vector<8x128xf32>
    %539 = arith.subf %538, %537 : vector<8x128xf32>
    %540 = vector.broadcast %527 : f32 to vector<8x128xf32>
    %541 = arith.mulf %540, %539 : vector<8x128xf32>
    %542 = arith.addf %524, %541 : vector<8x128xf32>
    %c30 = arith.constant 30 : index
    %543 = memref.load %arg1[%c30] : memref<128xf32, #tpu.memory_space<smem>>
    %c62 = arith.constant 62 : index
    %544 = memref.load %arg1[%c62] : memref<128xf32, #tpu.memory_space<smem>>
    %c94 = arith.constant 94 : index
    %545 = memref.load %arg1[%c94] : memref<128xf32, #tpu.memory_space<smem>>
    %c126 = arith.constant 126 : index
    %546 = memref.load %arg1[%c126] : memref<128xf32, #tpu.memory_space<smem>>
    %547 = vector.broadcast %543 : f32 to vector<8x128xf32>
    %548 = arith.mulf %0, %547 : vector<8x128xf32>
    %549 = vector.broadcast %546 : f32 to vector<8x128xf32>
    %550 = arith.addf %548, %549 : vector<8x128xf32>
    %551 = math.tanh %550 : vector<8x128xf32>
    %552 = vector.broadcast %544 : f32 to vector<8x128xf32>
    %553 = arith.mulf %552, %551 : vector<8x128xf32>
    %554 = arith.addf %536, %553 : vector<8x128xf32>
    %555 = arith.mulf %551, %551 : vector<8x128xf32>
    %cst_33 = arith.constant 1.000000e+00 : f32
    %556 = vector.broadcast %cst_33 : f32 to vector<8x128xf32>
    %557 = arith.subf %556, %555 : vector<8x128xf32>
    %558 = vector.broadcast %545 : f32 to vector<8x128xf32>
    %559 = arith.mulf %558, %557 : vector<8x128xf32>
    %560 = arith.addf %542, %559 : vector<8x128xf32>
    %c31 = arith.constant 31 : index
    %561 = memref.load %arg1[%c31] : memref<128xf32, #tpu.memory_space<smem>>
    %c63 = arith.constant 63 : index
    %562 = memref.load %arg1[%c63] : memref<128xf32, #tpu.memory_space<smem>>
    %c95 = arith.constant 95 : index
    %563 = memref.load %arg1[%c95] : memref<128xf32, #tpu.memory_space<smem>>
    %c127 = arith.constant 127 : index
    %564 = memref.load %arg1[%c127] : memref<128xf32, #tpu.memory_space<smem>>
    %565 = vector.broadcast %561 : f32 to vector<8x128xf32>
    %566 = arith.mulf %0, %565 : vector<8x128xf32>
    %567 = vector.broadcast %564 : f32 to vector<8x128xf32>
    %568 = arith.addf %566, %567 : vector<8x128xf32>
    %569 = math.tanh %568 : vector<8x128xf32>
    %570 = vector.broadcast %562 : f32 to vector<8x128xf32>
    %571 = arith.mulf %570, %569 : vector<8x128xf32>
    %572 = arith.addf %554, %571 : vector<8x128xf32>
    %573 = arith.mulf %569, %569 : vector<8x128xf32>
    %cst_34 = arith.constant 1.000000e+00 : f32
    %574 = vector.broadcast %cst_34 : f32 to vector<8x128xf32>
    %575 = arith.subf %574, %573 : vector<8x128xf32>
    %576 = vector.broadcast %563 : f32 to vector<8x128xf32>
    %577 = arith.mulf %576, %575 : vector<8x128xf32>
    %578 = arith.addf %560, %577 : vector<8x128xf32>
    %579 = arith.addf %0, %572 : vector<8x128xf32>
    %c0_35 = arith.constant 0 : index
    %c0_36 = arith.constant 0 : index
    %580 = vector.load %arg3[%c0_35, %c0_36] : memref<8x128xf32, #tpu.memory_space<vmem>>, vector<8x128xf32>
    tpu.vector_store %arg3[%c0_35, %c0_36], %579 {strides = array<i32>} : memref<8x128xf32, #tpu.memory_space<vmem>>, vector<8x128xf32>,
    %581 = math.absf %578 : vector<8x128xf32>
    %cst_37 = arith.constant 9.99999997E-7 : f32
    %582 = vector.broadcast %cst_37 : f32 to vector<8x128xf32>
    %583 = arith.addf %581, %582 : vector<8x128xf32>
    %584 = math.log %583 : vector<8x128xf32>
    %c0_38 = arith.constant 0 : index
    %c0_39 = arith.constant 0 : index
    %585 = vector.load %arg4[%c0_38, %c0_39] : memref<8x128xf32, #tpu.memory_space<vmem>>, vector<8x128xf32>
    tpu.vector_store %arg4[%c0_38, %c0_39], %584 {strides = array<i32>} : memref<8x128xf32, #tpu.memory_space<vmem>>, vector<8x128xf32>,
    return
  }
  func.func @transform_0(%arg0: i32) -> i32 {
    %c0_i32 = arith.constant 0 : i32
    %c0_i32_0 = arith.constant 0 : i32
    return %c0_i32 : i32
  }
  func.func @transform_1(%arg0: i32) -> (i32, i32) {
    %c0_i32 = arith.constant 0 : i32
    %c0_i32_0 = arith.constant 0 : i32
    return %arg0, %c0_i32 : i32, i32
  }
  func.func @transform_2(%arg0: i32) -> (i32, i32) {
    %c0_i32 = arith.constant 0 : i32
    %c0_i32_0 = arith.constant 0 : i32
    return %arg0, %c0_i32 : i32, i32
  }
  func.func @transform_3(%arg0: i32) -> (i32, i32) {
    %c0_i32 = arith.constant 0 : i32
    %c0_i32_0 = arith.constant 0 : i32
    return %arg0, %c0_i32 : i32, i32
  }
}

</mosaic_0001>

<bundles_post_ra>
// kernel: tpu_custom_call.1
= control target key start
LH: loop header
LB: loop body
LE: loop exit
PB: predicated region body
PF: predicated region fallthrough
CT: control target
= control target key end

     0   :  { %9 = vsyncpa [#allocation5], 0  ;;  %s1247_s0 = inlined_call_operand.hbm [shape: f32[128], index: 0, kind: input, shape index: {}]   ;;  %s1248_s1 = inlined_call_operand.hbm [shape: f32[8,128], index: 1, kind: input, shape index: {}]   ;;  %s1249_s2 = inlined_call_operand.hbm [shape: f32[8,128], index: 2, kind: output, shape index: {0}]   ;;  %s1250_s3 = inlined_call_operand.hbm [shape: f32[8,128], index: 3, kind: output, shape index: {1}]  }
   0x1   :  { %10 = vsyncpa [#allocation3], 0 }
   0x2   :  { %11 = vsyncpa [#allocation4], 0 }
   0x3   :  { %12 = vsyncpa [#allocation9], 0  ;;  %s18_s14 = sshll.u32 %s1247_s0, 4  ;;  %s27_s17 = sshll.u32 %s1248_s1, 4  ;;  %s19_s14 = int_to_ptr.hbm [resolvable:$true] %s18_s14  ;;  %s28_s17 = int_to_ptr.hbm [resolvable:$true] %s27_s17 }
   0x4   :  { %s918_s18 = smov [#allocation2]   ;;  %s919_s19 = smov [#allocation6]  }
   0x5   :  { %21 = dma.hbm_to_smem %s19_s14, 16, %s918_s18, [#allocation5]  }
   0x6   :  { %s29_s20 = sshll.u32 %s919_s19, 4  ;;  %s30_s20 = int_to_ptr.vmem [resolvable:$true] %s29_s20 }
   0x7   :  { %32 = dma.hbm_to_vmem [thread:$0]  %s28_s17, 128, %s30_s20, [#allocation3]  }
   0x8   :  { %910 = dma.done.wait [#allocation5], 16  }
   0x9   :  { %911 = vsyncadd [#allocation5], 4294967280 }
   0xa   :  { %912 = dma.done.wait [#allocation3], 128  }
   0xb   :  { %913 = vsyncadd [#allocation3], 4294967168 }
   0xc   :  { %41 = sfence }
   0xd   :  { %s43_s21 = sld [smem:[#allocation2]]  ;;  %v948_v0 = vld [vmem:[#allocation6] sm:$0xff] }
   0xe   :  { %s630_s22 = sld [smem:[#allocation2 + $0x60]] }
   0xf   :  { %s631_s0 = sld [smem:[#allocation2 + $0x1]] }
  0x10   :  { %s950_s23 = sld [smem:[#allocation2 + $0x20]] }
  0x11   :  { %s634_s1 = sld [smem:[#allocation2 + $0x61]] }
  0x12   :  { %s635_s24 = sld [smem:[#allocation2 + $0x2]] }
  0x13   :  { %v47_v1 = vstv %s43_s21  ;;  %s953_s25 = sld [smem:[#allocation2 + $0x40]] }
  0x14   :  { %v48_v2 = vmul.f32 %v47_v1, %v948_v0  ;;  %v49_v3 = vstv %s630_s22  ;;  %s955_s26 = sld [smem:[#allocation2 + $0x21]] }
  0x15   :  { %v64_v5 = vstv %s631_s0  ;;  %s638_s27 = sld [smem:[#allocation2 + $0x62]] }
  0x16   :  { %v50_v4 = vadd.f32 %v49_v3, %v48_v2  ;;  %v65_v6 = vmul.f32 %v64_v5, %v948_v0  ;;  %s639_s28 = sld [smem:[#allocation2 + $0x3]]  ;;  %v52_v13 = vstv %s950_s23 }
  0x17   :  { %s958_s29 = sld [smem:[#allocation2 + $0x41]]  ;;  %v66_v7 = vstv %s634_s1 }
  0x18   :  { %759 = vtanh.f32 %v50_v4  ;;  %v67_v8 = vadd.f32 %v66_v7, %v65_v6  ;;  %s960_s30 = sld [smem:[#allocation2 + $0x22]]  ;;  %v81_v9 = vstv %s635_s24 }
  0x19   :  { %v82_v10 = vmul.f32 %v81_v9, %v948_v0  ;;  %s642_s4 = sld [smem:[#allocation2 + $0x63]]  ;;  %v57_v18 = vstv %s953_s25 }
  0x1a   :  { %761 = vtanh.f32 %v67_v8  ;;  %s643_s5 = sld [smem:[#allocation2 + $0x4]]  ;;  %v69_v19 = vstv %s955_s26 }
  0x1b   :  { %s963_s6 = sld [smem:[#allocation2 + $0x42]]  ;;  %v83_v11 = vstv %s638_s27 }
  0x1c   :  { %v84_v14 = vadd.f32 %v83_v11, %v82_v10  ;;  %s966_s7 = sld [smem:[#allocation2 + $0x23]]  ;;  %v98_v15 = vstv %s639_s28 }
  0x1d   :  { %v99_v17 = vmul.f32 %v98_v15, %v948_v0  ;;  %s646_s8 = sld [smem:[#allocation2 + $0x64]]  ;;  %v74_v30 = vstv %s958_s29 }
  0x1e   :  { %v760_v12 = vpop.eup %759  ;;  %763 = vtanh.f32 %v84_v14  ;;  %s647_s9 = sld [smem:[#allocation2 + $0x5]]  ;;  %v86_v31 = vstv %s960_s30 }
  0x1f   :  { %v55_v16 = vmul.f32 %v760_v12, %v760_v12  ;;  %v53_v20 = vmul.f32 %v760_v12, %v52_v13  ;;  %s971_s10 = sld [smem:[#allocation2 + $0x43]]  ;;  %v100_v22 = vstv %s642_s4 }
  0x20   :  { %v762_v23 = vpop.eup %761  ;;  %v101_v24 = vadd.f32 %v100_v22, %v99_v17  ;;  %s973_s11 = sld [smem:[#allocation2 + $0x24]]  ;;  %v115_v25 = vstv %s643_s5 }
  0x21   :  { %v56_v21 = vsub.f32 1.0, %v55_v16  ;;  %v70_v27 = vmul.f32 %v762_v23, %v69_v19  ;;  %v72_v28 = vmul.f32 %v762_v23, %v762_v23  ;;  %v116_v29 = vmul.f32 %v115_v25, %v948_v0  ;;  %s650_s12 = sld [smem:[#allocation2 + $0x65]] }
  0x22   :  { %765 = vtanh.f32 %v101_v24  ;;  %s978_s13 = sld [smem:[#allocation2 + $0x6]]  ;;  %v91_v43 = vstv %s963_s6  ;;  %v103_v44 = vstv %s966_s7 }
  0x23   :  { %v58_v26 = vmul.f32 %v57_v18, %v56_v21  ;;  %v71_v33 = vadd.f32 %v70_v27, %v53_v20  ;;  %v73_v34 = vsub.f32 1.0, %v72_v28  ;;  %s980_s14 = sld [smem:[#allocation2 + $0x44]]  ;;  %v117_v35 = vstv %s646_s8 }
  0x24   :  { %v764_v36 = vpop.eup %763  ;;  %v118_v37 = vadd.f32 %v117_v35, %v116_v29  ;;  %s982_s15 = sld [smem:[#allocation2 + $0x25]]  ;;  %v132_v38 = vstv %s647_s9 }
  0x25   :  { %v59_v32 = vadd.f32 1.0, %v58_v26  ;;  %v75_v39 = vmul.f32 %v74_v30, %v73_v34  ;;  %v87_v40 = vmul.f32 %v764_v36, %v86_v31  ;;  %v89_v41 = vmul.f32 %v764_v36, %v764_v36  ;;  %s654_s16 = sld [smem:[#allocation2 + $0x66]] }
  0x26   :  { %v133_v42 = vmul.f32 %v132_v38, %v948_v0  ;;  %767 = vtanh.f32 %v118_v37  ;;  %s987_s17 = sld [smem:[#allocation2 + $0x7]]  ;;  %v108_v56 = vstv %s971_s10  ;;  %v120_v57 = vstv %s973_s11 }
  0x27   :  { %v76_v45 = vadd.f32 %v75_v39, %v59_v32  ;;  %v88_v46 = vadd.f32 %v87_v40, %v71_v33  ;;  %v90_v47 = vsub.f32 1.0, %v89_v41  ;;  %s989_s18 = sld [smem:[#allocation2 + $0x45]]  ;;  %v134_v48 = vstv %s650_s12 }
  0x28   :  { %v766_v49 = vpop.eup %765  ;;  %v135_v50 = vadd.f32 %v134_v48, %v133_v42  ;;  %s991_s19 = sld [smem:[#allocation2 + $0x26]]  ;;  %v149_v51 = vstv %s978_s13 }
  0x29   :  { %v92_v52 = vmul.f32 %v91_v43, %v90_v47  ;;  %v104_v53 = vmul.f32 %v766_v49, %v103_v44  ;;  %v106_v54 = vmul.f32 %v766_v49, %v766_v49  ;;  %v150_v55 = vmul.f32 %v149_v51, %v948_v0  ;;  %s658_s20 = sld [smem:[#allocation2 + $0x67]] }
  0x2a   :  { %769 = vtanh.f32 %v135_v50  ;;  %s997_s21 = sld [smem:[#allocation2 + $0x8]]  ;;  %v125_v6 = vstv %s980_s14  ;;  %v137_v7 = vstv %s982_s15 }
  0x2b   :  { %v93_v58 = vadd.f32 %v92_v52, %v76_v45  ;;  %v105_v59 = vadd.f32 %v104_v53, %v88_v46  ;;  %v107_v60 = vsub.f32 1.0, %v106_v54  ;;  %s999_s22 = sld [smem:[#allocation2 + $0x46]]  ;;  %v151_v61 = vstv %s654_s16 }
  0x2c   :  { %v768_v62 = vpop.eup %767  ;;  %v152_v63 = vadd.f32 %v151_v61, %v150_v55  ;;  %s1001_s0 = sld [smem:[#allocation2 + $0x27]]  ;;  %v166_v1 = vstv %s987_s17 }
  0x2d   :  { %v109_v2 = vmul.f32 %v108_v56, %v107_v60  ;;  %v121_v3 = vmul.f32 %v768_v62, %v120_v57  ;;  %v123_v4 = vmul.f32 %v768_v62, %v768_v62  ;;  %v167_v5 = vmul.f32 %v166_v1, %v948_v0  ;;  %s662_s23 = sld [smem:[#allocation2 + $0x68]] }
  0x2e   :  { %771 = vtanh.f32 %v152_v63  ;;  %s1007_s1 = sld [smem:[#allocation2 + $0x9]]  ;;  %v142_v19 = vstv %s989_s18  ;;  %v154_v20 = vstv %s991_s19 }
  0x2f   :  { %v110_v8 = vadd.f32 %v109_v2, %v93_v58  ;;  %v122_v9 = vadd.f32 %v121_v3, %v105_v59  ;;  %v124_v10 = vsub.f32 1.0, %v123_v4  ;;  %s1009_s24 = sld [smem:[#allocation2 + $0x47]]  ;;  %v168_v11 = vstv %s658_s20 }
  0x30   :  { %v770_v12 = vpop.eup %769  ;;  %v169_v13 = vadd.f32 %v168_v11, %v167_v5  ;;  %s1011_s25 = sld [smem:[#allocation2 + $0x28]]  ;;  %v183_v14 = vstv %s997_s21 }
  0x31   :  { %v126_v15 = vmul.f32 %v125_v6, %v124_v10  ;;  %v138_v16 = vmul.f32 %v770_v12, %v137_v7  ;;  %v140_v17 = vmul.f32 %v770_v12, %v770_v12  ;;  %v184_v18 = vmul.f32 %v183_v14, %v948_v0  ;;  %s666_s26 = sld [smem:[#allocation2 + $0x69]] }
  0x32   :  { %773 = vtanh.f32 %v169_v13  ;;  %s1017_s27 = sld [smem:[#allocation2 + $0xa]]  ;;  %v159_v32 = vstv %s999_s22  ;;  %v171_v33 = vstv %s1001_s0 }
  0x33   :  { %v127_v21 = vadd.f32 %v126_v15, %v110_v8  ;;  %v139_v22 = vadd.f32 %v138_v16, %v122_v9  ;;  %v141_v23 = vsub.f32 1.0, %v140_v17  ;;  %s1019_s28 = sld [smem:[#allocation2 + $0x48]]  ;;  %v185_v24 = vstv %s662_s23 }
  0x34   :  { %v772_v25 = vpop.eup %771  ;;  %v186_v26 = vadd.f32 %v185_v24, %v184_v18  ;;  %s1021_s29 = sld [smem:[#allocation2 + $0x29]]  ;;  %v200_v27 = vstv %s1007_s1 }
  0x35   :  { %v143_v28 = vmul.f32 %v142_v19, %v141_v23  ;;  %v155_v29 = vmul.f32 %v772_v25, %v154_v20  ;;  %v157_v30 = vmul.f32 %v772_v25, %v772_v25  ;;  %v201_v31 = vmul.f32 %v200_v27, %v948_v0  ;;  %s670_s30 = sld [smem:[#allocation2 + $0x6a]] }
  0x36   :  { %775 = vtanh.f32 %v186_v26  ;;  %s1027_s4 = sld [smem:[#allocation2 + $0xb]]  ;;  %v176_v45 = vstv %s1009_s24  ;;  %v188_v46 = vstv %s1011_s25 }
  0x37   :  { %v144_v34 = vadd.f32 %v143_v28, %v127_v21  ;;  %v156_v35 = vadd.f32 %v155_v29, %v139_v22  ;;  %v158_v36 = vsub.f32 1.0, %v157_v30  ;;  %s1029_s5 = sld [smem:[#allocation2 + $0x49]]  ;;  %v202_v37 = vstv %s666_s26 }
  0x38   :  { %v774_v38 = vpop.eup %773  ;;  %v203_v39 = vadd.f32 %v202_v37, %v201_v31  ;;  %s1031_s6 = sld [smem:[#allocation2 + $0x2a]]  ;;  %v217_v40 = vstv %s1017_s27 }
  0x39   :  { %v160_v41 = vmul.f32 %v159_v32, %v158_v36  ;;  %v172_v42 = vmul.f32 %v774_v38, %v171_v33  ;;  %v174_v43 = vmul.f32 %v774_v38, %v774_v38  ;;  %v218_v44 = vmul.f32 %v217_v40, %v948_v0  ;;  %s674_s7 = sld [smem:[#allocation2 + $0x6b]] }
  0x3a   :  { %777 = vtanh.f32 %v203_v39  ;;  %s1037_s8 = sld [smem:[#allocation2 + $0xc]]  ;;  %v193_v58 = vstv %s1019_s28  ;;  %v205_v59 = vstv %s1021_s29 }
  0x3b   :  { %v161_v47 = vadd.f32 %v160_v41, %v144_v34  ;;  %v173_v48 = vadd.f32 %v172_v42, %v156_v35  ;;  %v175_v49 = vsub.f32 1.0, %v174_v43  ;;  %s1039_s9 = sld [smem:[#allocation2 + $0x4a]]  ;;  %v219_v50 = vstv %s670_s30 }
  0x3c   :  { %v776_v51 = vpop.eup %775  ;;  %v220_v52 = vadd.f32 %v219_v50, %v218_v44  ;;  %s1041_s10 = sld [smem:[#allocation2 + $0x2b]]  ;;  %v234_v53 = vstv %s1027_s4 }
  0x3d   :  { %v177_v54 = vmul.f32 %v176_v45, %v175_v49  ;;  %v189_v55 = vmul.f32 %v776_v51, %v188_v46  ;;  %v191_v56 = vmul.f32 %v776_v51, %v776_v51  ;;  %v235_v57 = vmul.f32 %v234_v53, %v948_v0  ;;  %s678_s11 = sld [smem:[#allocation2 + $0x6c]] }
  0x3e   :  { %779 = vtanh.f32 %v220_v52  ;;  %s1047_s12 = sld [smem:[#allocation2 + $0xd]]  ;;  %v210_v8 = vstv %s1029_s5  ;;  %v222_v9 = vstv %s1031_s6 }
  0x3f   :  { %v178_v60 = vadd.f32 %v177_v54, %v161_v47  ;;  %v190_v61 = vadd.f32 %v189_v55, %v173_v48  ;;  %v192_v62 = vsub.f32 1.0, %v191_v56  ;;  %s1049_s13 = sld [smem:[#allocation2 + $0x4b]]  ;;  %v236_v63 = vstv %s674_s7 }
  0x40   :  { %v778_v1 = vpop.eup %777  ;;  %v237_v2 = vadd.f32 %v236_v63, %v235_v57  ;;  %s1051_s14 = sld [smem:[#allocation2 + $0x2c]]  ;;  %v251_v3 = vstv %s1037_s8 }
  0x41   :  { %v194_v4 = vmul.f32 %v193_v58, %v192_v62  ;;  %v206_v5 = vmul.f32 %v778_v1, %v205_v59  ;;  %v208_v6 = vmul.f32 %v778_v1, %v778_v1  ;;  %v252_v7 = vmul.f32 %v251_v3, %v948_v0  ;;  %s682_s15 = sld [smem:[#allocation2 + $0x6d]] }
  0x42   :  { %781 = vtanh.f32 %v237_v2  ;;  %s1057_s16 = sld [smem:[#allocation2 + $0xe]]  ;;  %v227_v21 = vstv %s1039_s9  ;;  %v239_v22 = vstv %s1041_s10 }
  0x43   :  { %v195_v10 = vadd.f32 %v194_v4, %v178_v60  ;;  %v207_v11 = vadd.f32 %v206_v5, %v190_v61  ;;  %v209_v12 = vsub.f32 1.0, %v208_v6  ;;  %s1059_s17 = sld [smem:[#allocation2 + $0x4c]]  ;;  %v253_v13 = vstv %s678_s11 }
  0x44   :  { %v780_v14 = vpop.eup %779  ;;  %v254_v15 = vadd.f32 %v253_v13, %v252_v7  ;;  %s1061_s18 = sld [smem:[#allocation2 + $0x2d]]  ;;  %v268_v16 = vstv %s1047_s12 }
  0x45   :  { %v211_v17 = vmul.f32 %v210_v8, %v209_v12  ;;  %v223_v18 = vmul.f32 %v780_v14, %v222_v9  ;;  %v225_v19 = vmul.f32 %v780_v14, %v780_v14  ;;  %v269_v20 = vmul.f32 %v268_v16, %v948_v0  ;;  %s686_s19 = sld [smem:[#allocation2 + $0x6e]] }
  0x46   :  { %783 = vtanh.f32 %v254_v15  ;;  %s1067_s20 = sld [smem:[#allocation2 + $0xf]]  ;;  %v244_v34 = vstv %s1049_s13  ;;  %v256_v35 = vstv %s1051_s14 }
  0x47   :  { %v212_v23 = vadd.f32 %v211_v17, %v195_v10  ;;  %v224_v24 = vadd.f32 %v223_v18, %v207_v11  ;;  %v226_v25 = vsub.f32 1.0, %v225_v19  ;;  %s1069_s21 = sld [smem:[#allocation2 + $0x4d]]  ;;  %v270_v26 = vstv %s682_s15 }
  0x48   :  { %v782_v27 = vpop.eup %781  ;;  %v271_v28 = vadd.f32 %v270_v26, %v269_v20  ;;  %s1071_s22 = sld [smem:[#allocation2 + $0x2e]]  ;;  %v285_v29 = vstv %s1057_s16 }
  0x49   :  { %v228_v30 = vmul.f32 %v227_v21, %v226_v25  ;;  %v240_v31 = vmul.f32 %v782_v27, %v239_v22  ;;  %v242_v32 = vmul.f32 %v782_v27, %v782_v27  ;;  %v286_v33 = vmul.f32 %v285_v29, %v948_v0  ;;  %s690_s0 = sld [smem:[#allocation2 + $0x6f]] }
  0x4a   :  { %785 = vtanh.f32 %v271_v28  ;;  %s1077_s23 = sld [smem:[#allocation2 + $0x10]]  ;;  %v261_v47 = vstv %s1059_s17  ;;  %v273_v48 = vstv %s1061_s18 }
  0x4b   :  { %v229_v36 = vadd.f32 %v228_v30, %v212_v23  ;;  %v241_v37 = vadd.f32 %v240_v31, %v224_v24  ;;  %v243_v38 = vsub.f32 1.0, %v242_v32  ;;  %s1079_s1 = sld [smem:[#allocation2 + $0x4e]]  ;;  %v287_v39 = vstv %s686_s19 }
  0x4c   :  { %v784_v40 = vpop.eup %783  ;;  %v288_v41 = vadd.f32 %v287_v39, %v286_v33  ;;  %s1081_s24 = sld [smem:[#allocation2 + $0x2f]]  ;;  %v302_v42 = vstv %s1067_s20 }
  0x4d   :  { %v245_v43 = vmul.f32 %v244_v34, %v243_v38  ;;  %v257_v44 = vmul.f32 %v784_v40, %v256_v35  ;;  %v259_v45 = vmul.f32 %v784_v40, %v784_v40  ;;  %v303_v46 = vmul.f32 %v302_v42, %v948_v0  ;;  %s694_s25 = sld [smem:[#allocation2 + $0x70]] }
  0x4e   :  { %787 = vtanh.f32 %v288_v41  ;;  %s1087_s26 = sld [smem:[#allocation2 + $0x11]]  ;;  %v278_v60 = vstv %s1069_s21  ;;  %v290_v61 = vstv %s1071_s22 }
  0x4f   :  { %v246_v49 = vadd.f32 %v245_v43, %v229_v36  ;;  %v258_v50 = vadd.f32 %v257_v44, %v241_v37  ;;  %v260_v51 = vsub.f32 1.0, %v259_v45  ;;  %s1089_s27 = sld [smem:[#allocation2 + $0x4f]]  ;;  %v304_v52 = vstv %s690_s0 }
  0x50   :  { %v786_v53 = vpop.eup %785  ;;  %v305_v54 = vadd.f32 %v304_v52, %v303_v46  ;;  %s1091_s28 = sld [smem:[#allocation2 + $0x30]]  ;;  %v319_v55 = vstv %s1077_s23 }
  0x51   :  { %v262_v56 = vmul.f32 %v261_v47, %v260_v51  ;;  %v274_v57 = vmul.f32 %v786_v53, %v273_v48  ;;  %v276_v58 = vmul.f32 %v786_v53, %v786_v53  ;;  %v320_v59 = vmul.f32 %v319_v55, %v948_v0  ;;  %s698_s29 = sld [smem:[#allocation2 + $0x71]] }
  0x52   :  { %789 = vtanh.f32 %v305_v54  ;;  %s1097_s30 = sld [smem:[#allocation2 + $0x12]]  ;;  %v295_v10 = vstv %s1079_s1  ;;  %v307_v11 = vstv %s1081_s24 }
  0x53   :  { %v263_v62 = vadd.f32 %v262_v56, %v246_v49  ;;  %v275_v63 = vadd.f32 %v274_v57, %v258_v50  ;;  %v277_v1 = vsub.f32 1.0, %v276_v58  ;;  %s1099_s4 = sld [smem:[#allocation2 + $0x50]]  ;;  %v321_v2 = vstv %s694_s25 }
  0x54   :  { %v788_v3 = vpop.eup %787  ;;  %v322_v4 = vadd.f32 %v321_v2, %v320_v59  ;;  %s1101_s5 = sld [smem:[#allocation2 + $0x31]]  ;;  %v336_v5 = vstv %s1087_s26 }
  0x55   :  { %v279_v6 = vmul.f32 %v278_v60, %v277_v1  ;;  %v291_v7 = vmul.f32 %v788_v3, %v290_v61  ;;  %v293_v8 = vmul.f32 %v788_v3, %v788_v3  ;;  %v337_v9 = vmul.f32 %v336_v5, %v948_v0  ;;  %s702_s6 = sld [smem:[#allocation2 + $0x72]] }
  0x56   :  { %791 = vtanh.f32 %v322_v4  ;;  %s1107_s7 = sld [smem:[#allocation2 + $0x13]]  ;;  %v312_v23 = vstv %s1089_s27  ;;  %v324_v24 = vstv %s1091_s28 }
  0x57   :  { %v280_v12 = vadd.f32 %v279_v6, %v263_v62  ;;  %v292_v13 = vadd.f32 %v291_v7, %v275_v63  ;;  %v294_v14 = vsub.f32 1.0, %v293_v8  ;;  %s1109_s8 = sld [smem:[#allocation2 + $0x51]]  ;;  %v338_v15 = vstv %s698_s29 }
  0x58   :  { %v790_v16 = vpop.eup %789  ;;  %v339_v17 = vadd.f32 %v338_v15, %v337_v9  ;;  %s1111_s9 = sld [smem:[#allocation2 + $0x32]]  ;;  %v353_v18 = vstv %s1097_s30 }
  0x59   :  { %v296_v19 = vmul.f32 %v295_v10, %v294_v14  ;;  %v308_v20 = vmul.f32 %v790_v16, %v307_v11  ;;  %v310_v21 = vmul.f32 %v790_v16, %v790_v16  ;;  %v354_v22 = vmul.f32 %v353_v18, %v948_v0  ;;  %s706_s10 = sld [smem:[#allocation2 + $0x73]] }
  0x5a   :  { %793 = vtanh.f32 %v339_v17  ;;  %s1117_s11 = sld [smem:[#allocation2 + $0x14]]  ;;  %v329_v36 = vstv %s1099_s4  ;;  %v341_v37 = vstv %s1101_s5 }
  0x5b   :  { %v297_v25 = vadd.f32 %v296_v19, %v280_v12  ;;  %v309_v26 = vadd.f32 %v308_v20, %v292_v13  ;;  %v311_v27 = vsub.f32 1.0, %v310_v21  ;;  %s1119_s12 = sld [smem:[#allocation2 + $0x52]]  ;;  %v355_v28 = vstv %s702_s6 }
  0x5c   :  { %v792_v29 = vpop.eup %791  ;;  %v356_v30 = vadd.f32 %v355_v28, %v354_v22  ;;  %s1121_s13 = sld [smem:[#allocation2 + $0x33]]  ;;  %v370_v31 = vstv %s1107_s7 }
  0x5d   :  { %v313_v32 = vmul.f32 %v312_v23, %v311_v27  ;;  %v325_v33 = vmul.f32 %v792_v29, %v324_v24  ;;  %v327_v34 = vmul.f32 %v792_v29, %v792_v29  ;;  %v371_v35 = vmul.f32 %v370_v31, %v948_v0  ;;  %s710_s14 = sld [smem:[#allocation2 + $0x74]] }
  0x5e   :  { %795 = vtanh.f32 %v356_v30  ;;  %s1127_s15 = sld [smem:[#allocation2 + $0x15]]  ;;  %v346_v49 = vstv %s1109_s8  ;;  %v358_v50 = vstv %s1111_s9 }
  0x5f   :  { %v314_v38 = vadd.f32 %v313_v32, %v297_v25  ;;  %v326_v39 = vadd.f32 %v325_v33, %v309_v26  ;;  %v328_v40 = vsub.f32 1.0, %v327_v34  ;;  %s1129_s16 = sld [smem:[#allocation2 + $0x53]]  ;;  %v372_v41 = vstv %s706_s10 }
  0x60   :  { %v794_v42 = vpop.eup %793  ;;  %v373_v43 = vadd.f32 %v372_v41, %v371_v35  ;;  %s1131_s17 = sld [smem:[#allocation2 + $0x34]]  ;;  %v387_v44 = vstv %s1117_s11 }
  0x61   :  { %v330_v45 = vmul.f32 %v329_v36, %v328_v40  ;;  %v342_v46 = vmul.f32 %v794_v42, %v341_v37  ;;  %v344_v47 = vmul.f32 %v794_v42, %v794_v42  ;;  %v388_v48 = vmul.f32 %v387_v44, %v948_v0  ;;  %s714_s18 = sld [smem:[#allocation2 + $0x75]] }
  0x62   :  { %797 = vtanh.f32 %v373_v43  ;;  %s1137_s19 = sld [smem:[#allocation2 + $0x16]]  ;;  %v363_v62 = vstv %s1119_s12  ;;  %v375_v63 = vstv %s1121_s13 }
  0x63   :  { %v331_v51 = vadd.f32 %v330_v45, %v314_v38  ;;  %v343_v52 = vadd.f32 %v342_v46, %v326_v39  ;;  %v345_v53 = vsub.f32 1.0, %v344_v47  ;;  %s1139_s20 = sld [smem:[#allocation2 + $0x54]]  ;;  %v389_v54 = vstv %s710_s14 }
  0x64   :  { %v796_v55 = vpop.eup %795  ;;  %v390_v56 = vadd.f32 %v389_v54, %v388_v48  ;;  %s1141_s21 = sld [smem:[#allocation2 + $0x35]]  ;;  %v404_v57 = vstv %s1127_s15 }
  0x65   :  { %v347_v58 = vmul.f32 %v346_v49, %v345_v53  ;;  %v359_v59 = vmul.f32 %v796_v55, %v358_v50  ;;  %v361_v60 = vmul.f32 %v796_v55, %v796_v55  ;;  %v405_v61 = vmul.f32 %v404_v57, %v948_v0  ;;  %s718_s22 = sld [smem:[#allocation2 + $0x76]] }
  0x66   :  { %799 = vtanh.f32 %v390_v56  ;;  %s1147_s0 = sld [smem:[#allocation2 + $0x17]]  ;;  %v380_v12 = vstv %s1129_s16  ;;  %v392_v13 = vstv %s1131_s17 }
  0x67   :  { %v348_v1 = vadd.f32 %v347_v58, %v331_v51  ;;  %v360_v2 = vadd.f32 %v359_v59, %v343_v52  ;;  %v362_v3 = vsub.f32 1.0, %v361_v60  ;;  %s1149_s23 = sld [smem:[#allocation2 + $0x55]]  ;;  %v406_v4 = vstv %s714_s18 }
  0x68   :  { %v798_v5 = vpop.eup %797  ;;  %v407_v6 = vadd.f32 %v406_v4, %v405_v61  ;;  %s1151_s1 = sld [smem:[#allocation2 + $0x36]]  ;;  %v421_v7 = vstv %s1137_s19 }
  0x69   :  { %v364_v8 = vmul.f32 %v363_v62, %v362_v3  ;;  %v376_v9 = vmul.f32 %v798_v5, %v375_v63  ;;  %v378_v10 = vmul.f32 %v798_v5, %v798_v5  ;;  %v422_v11 = vmul.f32 %v421_v7, %v948_v0  ;;  %s722_s24 = sld [smem:[#allocation2 + $0x77]] }
  0x6a   :  { %801 = vtanh.f32 %v407_v6  ;;  %s1157_s25 = sld [smem:[#allocation2 + $0x18]]  ;;  %v397_v25 = vstv %s1139_s20  ;;  %v409_v26 = vstv %s1141_s21 }
  0x6b   :  { %v365_v14 = vadd.f32 %v364_v8, %v348_v1  ;;  %v377_v15 = vadd.f32 %v376_v9, %v360_v2  ;;  %v379_v16 = vsub.f32 1.0, %v378_v10  ;;  %s1159_s26 = sld [smem:[#allocation2 + $0x56]]  ;;  %v423_v17 = vstv %s718_s22 }
  0x6c   :  { %v800_v18 = vpop.eup %799  ;;  %v424_v19 = vadd.f32 %v423_v17, %v422_v11  ;;  %s1161_s27 = sld [smem:[#allocation2 + $0x37]]  ;;  %v438_v20 = vstv %s1147_s0 }
  0x6d   :  { %v381_v21 = vmul.f32 %v380_v12, %v379_v16  ;;  %v393_v22 = vmul.f32 %v800_v18, %v392_v13  ;;  %v395_v23 = vmul.f32 %v800_v18, %v800_v18  ;;  %v439_v24 = vmul.f32 %v438_v20, %v948_v0  ;;  %s726_s28 = sld [smem:[#allocation2 + $0x78]] }
  0x6e   :  { %803 = vtanh.f32 %v424_v19  ;;  %s1167_s29 = sld [smem:[#allocation2 + $0x19]]  ;;  %v414_v38 = vstv %s1149_s23  ;;  %v426_v39 = vstv %s1151_s1 }
  0x6f   :  { %v382_v27 = vadd.f32 %v381_v21, %v365_v14  ;;  %v394_v28 = vadd.f32 %v393_v22, %v377_v15  ;;  %v396_v29 = vsub.f32 1.0, %v395_v23  ;;  %s1169_s30 = sld [smem:[#allocation2 + $0x57]]  ;;  %v440_v30 = vstv %s722_s24 }
  0x70   :  { %v802_v31 = vpop.eup %801  ;;  %v441_v32 = vadd.f32 %v440_v30, %v439_v24  ;;  %s1171_s4 = sld [smem:[#allocation2 + $0x38]]  ;;  %v455_v33 = vstv %s1157_s25 }
  0x71   :  { %v398_v34 = vmul.f32 %v397_v25, %v396_v29  ;;  %v410_v35 = vmul.f32 %v802_v31, %v409_v26  ;;  %v412_v36 = vmul.f32 %v802_v31, %v802_v31  ;;  %v456_v37 = vmul.f32 %v455_v33, %v948_v0  ;;  %s730_s5 = sld [smem:[#allocation2 + $0x79]] }
  0x72   :  { %805 = vtanh.f32 %v441_v32  ;;  %s1177_s6 = sld [smem:[#allocation2 + $0x1a]]  ;;  %v431_v51 = vstv %s1159_s26  ;;  %v443_v52 = vstv %s1161_s27 }
  0x73   :  { %v399_v40 = vadd.f32 %v398_v34, %v382_v27  ;;  %v411_v41 = vadd.f32 %v410_v35, %v394_v28  ;;  %v413_v42 = vsub.f32 1.0, %v412_v36  ;;  %s1179_s7 = sld [smem:[#allocation2 + $0x58]]  ;;  %v457_v43 = vstv %s726_s28 }
  0x74   :  { %v804_v44 = vpop.eup %803  ;;  %v458_v45 = vadd.f32 %v457_v43, %v456_v37  ;;  %s1181_s8 = sld [smem:[#allocation2 + $0x39]]  ;;  %v472_v46 = vstv %s1167_s29 }
  0x75   :  { %v415_v47 = vmul.f32 %v414_v38, %v413_v42  ;;  %v427_v48 = vmul.f32 %v804_v44, %v426_v39  ;;  %v429_v49 = vmul.f32 %v804_v44, %v804_v44  ;;  %v473_v50 = vmul.f32 %v472_v46, %v948_v0  ;;  %s734_s9 = sld [smem:[#allocation2 + $0x7a]] }
  0x76   :  { %807 = vtanh.f32 %v458_v45  ;;  %s1187_s10 = sld [smem:[#allocation2 + $0x1b]]  ;;  %v448_v1 = vstv %s1169_s30  ;;  %v460_v2 = vstv %s1171_s4  ;;  %s920_s4 = smov [#allocation7]  }
  0x77   :  { %v416_v53 = vadd.f32 %v415_v47, %v399_v40  ;;  %v428_v54 = vadd.f32 %v427_v48, %v411_v41  ;;  %v430_v55 = vsub.f32 1.0, %v429_v49  ;;  %s1189_s11 = sld [smem:[#allocation2 + $0x59]]  ;;  %v474_v56 = vstv %s730_s5  ;;  %s599_s5 = sshll.u32 %s920_s4, 4  ;;  %s600_s5 = int_to_ptr.vmem [resolvable:$true] %s599_s5 }
  0x78   :  { %v806_v57 = vpop.eup %805  ;;  %v475_v58 = vadd.f32 %v474_v56, %v473_v50  ;;  %s1191_s12 = sld [smem:[#allocation2 + $0x3a]]  ;;  %v489_v59 = vstv %s1177_s6 }
  0x79   :  { %v432_v60 = vmul.f32 %v431_v51, %v430_v55  ;;  %v444_v61 = vmul.f32 %v806_v57, %v443_v52  ;;  %v446_v62 = vmul.f32 %v806_v57, %v806_v57  ;;  %v490_v63 = vmul.f32 %v489_v59, %v948_v0  ;;  %s738_s13 = sld [smem:[#allocation2 + $0x7b]] }
  0x7a   :  { %809 = vtanh.f32 %v475_v58  ;;  %s1197_s14 = sld [smem:[#allocation2 + $0x1c]]  ;;  %v465_v14 = vstv %s1179_s7  ;;  %v477_v15 = vstv %s1181_s8  ;;  %s601_s8 = sshll.u32 %s1249_s2, 4  ;;  %s602_s8 = int_to_ptr.hbm [resolvable:$true] %s601_s8 }
  0x7b   :  { %v433_v3 = vadd.f32 %v432_v60, %v416_v53  ;;  %v445_v4 = vadd.f32 %v444_v61, %v428_v54  ;;  %v447_v5 = vsub.f32 1.0, %v446_v62  ;;  %s1199_s15 = sld [smem:[#allocation2 + $0x5a]]  ;;  %v491_v6 = vstv %s734_s9  ;;  %s921_s9 = smov [#allocation8]  }
  0x7c   :  { %v808_v7 = vpop.eup %807  ;;  %v492_v8 = vadd.f32 %v491_v6, %v490_v63  ;;  %s1201_s16 = sld [smem:[#allocation2 + $0x3b]]  ;;  %v506_v9 = vstv %s1187_s10  ;;  %s610_s10 = sshll.u32 %s921_s9, 4  ;;  %s611_s10 = int_to_ptr.vmem [resolvable:$true] %s610_s10 }
  0x7d   :  { %v449_v10 = vmul.f32 %v448_v1, %v447_v5  ;;  %v461_v11 = vmul.f32 %v808_v7, %v460_v2  ;;  %v463_v12 = vmul.f32 %v808_v7, %v808_v7  ;;  %v507_v13 = vmul.f32 %v506_v9, %v948_v0  ;;  %s742_s17 = sld [smem:[#allocation2 + $0x7c]] }
  0x7e   :  { %811 = vtanh.f32 %v492_v8  ;;  %s1207_s18 = sld [smem:[#allocation2 + $0x1d]]  ;;  %v482_v27 = vstv %s1189_s11  ;;  %v494_v28 = vstv %s1191_s12 }
  0x7f   :  { %v450_v16 = vadd.f32 %v449_v10, %v433_v3  ;;  %v462_v17 = vadd.f32 %v461_v11, %v445_v4  ;;  %v464_v18 = vsub.f32 1.0, %v463_v12  ;;  %s1209_s19 = sld [smem:[#allocation2 + $0x5b]]  ;;  %v508_v19 = vstv %s738_s13  ;;  %s612_s13 = sshll.u32 %s1250_s3, 4  ;;  %s613_s13 = int_to_ptr.hbm [resolvable:$true] %s612_s13 }
  0x80   :  { %v810_v20 = vpop.eup %809  ;;  %v509_v21 = vadd.f32 %v508_v19, %v507_v13  ;;  %s1211_s20 = sld [smem:[#allocation2 + $0x3c]]  ;;  %v523_v22 = vstv %s1197_s14 }
  0x81   :  { %v466_v23 = vmul.f32 %v465_v14, %v464_v18  ;;  %v478_v24 = vmul.f32 %v810_v20, %v477_v15  ;;  %v480_v25 = vmul.f32 %v810_v20, %v810_v20  ;;  %v524_v26 = vmul.f32 %v523_v22, %v948_v0  ;;  %s746_s21 = sld [smem:[#allocation2 + $0x7d]] }
  0x82   :  { %813 = vtanh.f32 %v509_v21  ;;  %s1217_s22 = sld [smem:[#allocation2 + $0x1e]]  ;;  %v499_v40 = vstv %s1199_s15  ;;  %v511_v41 = vstv %s1201_s16 }
  0x83   :  { %v467_v29 = vadd.f32 %v466_v23, %v450_v16  ;;  %v479_v30 = vadd.f32 %v478_v24, %v462_v17  ;;  %v481_v31 = vsub.f32 1.0, %v480_v25  ;;  %s1219_s0 = sld [smem:[#allocation2 + $0x5c]]  ;;  %v525_v32 = vstv %s742_s17 }
  0x84   :  { %v812_v33 = vpop.eup %811  ;;  %v526_v34 = vadd.f32 %v525_v32, %v524_v26  ;;  %s1221_s23 = sld [smem:[#allocation2 + $0x3d]]  ;;  %v540_v35 = vstv %s1207_s18 }
  0x85   :  { %v483_v36 = vmul.f32 %v482_v27, %v481_v31  ;;  %v495_v37 = vmul.f32 %v812_v33, %v494_v28  ;;  %v497_v38 = vmul.f32 %v812_v33, %v812_v33  ;;  %v541_v39 = vmul.f32 %v540_v35, %v948_v0  ;;  %s750_s1 = sld [smem:[#allocation2 + $0x7e]]  ;;  %v825_v0 = vld [vmem:[#allocation6] sm:$0xff] }
  0x86   :  { %815 = vtanh.f32 %v526_v34  ;;  %s751_s24 = sld [smem:[#allocation2 + $0x1f]]  ;;  %v516_v53 = vstv %s1209_s19  ;;  %v528_v54 = vstv %s1211_s20 }
  0x87   :  { %v484_v42 = vadd.f32 %v483_v36, %v467_v29  ;;  %v496_v43 = vadd.f32 %v495_v37, %v479_v30  ;;  %v498_v44 = vsub.f32 1.0, %v497_v38  ;;  %v542_v45 = vstv %s746_s21  ;;  %s1227_s25 = sld [smem:[#allocation2 + $0x5d]] }
  0x88   :  { %v814_v46 = vpop.eup %813  ;;  %v543_v47 = vadd.f32 %v542_v45, %v541_v39  ;;  %v557_v48 = vstv %s1217_s22  ;;  %s754_s26 = sld [smem:[#allocation2 + $0x7f]] }
  0x89   :  { %v500_v49 = vmul.f32 %v499_v40, %v498_v44  ;;  %v512_v50 = vmul.f32 %v814_v46, %v511_v41  ;;  %v514_v51 = vmul.f32 %v814_v46, %v814_v46  ;;  %v558_v52 = vmul.f32 %v825_v0, %v557_v48  ;;  %s1232_s27 = sld [smem:[#allocation2 + $0x3e]] }
  0x8a   :  { %817 = vtanh.f32 %v543_v47  ;;  %s1234_s28 = sld [smem:[#allocation2 + $0x5e]]  ;;  %v533_v3 = vstv %s1219_s0  ;;  %v545_v4 = vstv %s1221_s23 }
  0x8b   :  { %v501_v55 = vadd.f32 %v500_v49, %v484_v42  ;;  %v513_v56 = vadd.f32 %v512_v50, %v496_v43  ;;  %v515_v57 = vsub.f32 1.0, %v514_v51  ;;  %v559_v58 = vstv %s750_s1  ;;  %s752_s29 = sld [smem:[#allocation2 + $0x3f]] }
  0x8c   :  { %v816_v59 = vpop.eup %815  ;;  %v560_v60 = vadd.f32 %v559_v58, %v558_v52  ;;  %v574_v61 = vstv %s751_s24  ;;  %s753_s30 = sld [smem:[#allocation2 + $0x5f]] }
  0x8d   :  { %v517_v62 = vmul.f32 %v516_v53, %v515_v57  ;;  %v529_v63 = vmul.f32 %v816_v59, %v528_v54  ;;  %v531_v1 = vmul.f32 %v816_v59, %v816_v59  ;;  %v575_v2 = vmul.f32 %v825_v0, %v574_v61 }
  0x8e   :  { %819 = vtanh.f32 %v560_v60  ;;  %v576_v8 = vstv %s754_s26  ;;  %v550_v14 = vstv %s1227_s25 }
  0x8f   :  { %v518_v5 = vadd.f32 %v517_v62, %v501_v55  ;;  %v530_v6 = vadd.f32 %v529_v63, %v513_v56  ;;  %v532_v7 = vsub.f32 1.0, %v531_v1  ;;  %v577_v10 = vadd.f32 %v576_v8, %v575_v2 }
  0x90   :  { %v818_v9 = vpop.eup %817  ;;  %v562_v15 = vstv %s1232_s27  ;;  %v567_v23 = vstv %s1234_s28 }
  0x91   :  { %v534_v11 = vmul.f32 %v533_v3, %v532_v7  ;;  %v546_v12 = vmul.f32 %v818_v9, %v545_v4  ;;  %v548_v13 = vmul.f32 %v818_v9, %v818_v9  ;;  %821 = vtanh.f32 %v577_v10 }
  0x92   :  { %v579_v24 = vstv %s752_s29  ;;  %v584_v32 = vstv %s753_s30 }
  0x93   :  { %v535_v16 = vadd.f32 %v534_v11, %v518_v5  ;;  %v547_v17 = vadd.f32 %v546_v12, %v530_v6  ;;  %v549_v18 = vsub.f32 1.0, %v548_v13 }
  0x94   :  { %v820_v19 = vpop.eup %819 }
  0x95   :  { %v551_v20 = vmul.f32 %v550_v14, %v549_v18  ;;  %v563_v21 = vmul.f32 %v820_v19, %v562_v15  ;;  %v565_v22 = vmul.f32 %v820_v19, %v820_v19 }
  0x97   :  { %v552_v25 = vadd.f32 %v551_v20, %v535_v16  ;;  %v564_v26 = vadd.f32 %v563_v21, %v547_v17  ;;  %v566_v27 = vsub.f32 1.0, %v565_v22  ;;  %v822_v28 = vpop.eup %821 }
  0x98   :  { %v580_v30 = vmul.f32 %v822_v28, %v579_v24  ;;  %v582_v31 = vmul.f32 %v822_v28, %v822_v28 }
  0x99   :  { %v568_v29 = vmul.f32 %v567_v23, %v566_v27 }
  0x9a   :  { %v581_v34 = vadd.f32 %v580_v30, %v564_v26  ;;  %v583_v35 = vsub.f32 1.0, %v582_v31 }
  0x9b   :  { %v569_v33 = vadd.f32 %v568_v29, %v552_v25 }
  0x9c   :  { %v585_v36 = vmul.f32 %v584_v32, %v583_v35  ;;  %v587_v37 = vadd.f32 %v825_v0, %v581_v34 }
  0x9e   :  { %v586_v38 = vadd.f32 %v585_v36, %v569_v33  ;;  %588 = vst [vmem:[#allocation7] sm:$0xff] %v587_v37 }
  0x9f   :  { %604 = dma.vmem_to_hbm [thread:$0]  %s600_s5, 128, %s602_s8, [#allocation4]  }
  0xa0   :  { %v589_v39 = vand.u32 2147483647, %v586_v38 }
  0xa2   :  { %v590_v40 = vadd.f32 1e-06, %v589_v39 }
  0xa4   :  { %823 = vlog2.f32 %v590_v40 }
  0xaa   :  { %v824_v41 = vpop.eup %823 }
  0xab   :  { %v592_v42 = vmul.f32 0.6931472, %v824_v41 }
  0xad   :  { %593 = vst [vmem:[#allocation8] sm:$0xff] %v592_v42 }
  0xae   :  { %615 = dma.vmem_to_hbm [thread:$0]  %s611_s10, 128, %s613_s13, [#allocation9]  }
  0xaf   :  { %914 = dma.done.wait [#allocation4], 128  }
  0xb0   :  { %915 = vsyncadd [#allocation4], 4294967168 }
  0xb1   :  { %916 = dma.done.wait [#allocation9], 128  }
  0xb2   :  { %917 = vsyncadd [#allocation9], 4294967168 }
  0xb3   :  { %624 = vsyncpa [#allocation3], 1 }
  0xb4   :  { %625 = vsyncpa [#allocation4], 1 }
  0xb5   :  { %626 = vsyncpa [#allocation9], 1 }
  0xb6   :  { %627 = vsyncpa [#allocation5], 1 }

</bundles_post_ra>
